<compile_context>
chip_gen: v7x
topology: tpu7x:2x2x1
jax: 0.10.0
libtpu: 0.0.40
codegen_flags: <defaults>
</compile_context>

<pallas_src>
import jax
import jax.numpy as jnp
from jax.experimental import pallas as pl
from jax.experimental.pallas import tpu as pltpu

BN_EPS = 1e-5


def _round_up(n, m):
    return ((n + m - 1) // m) * m


def _resblock_kernel(x_ref, scale_ref, shift_ref, m1_ref, w1_ref, b1_ref,
                     m2_ref, w2_ref, b2_ref, o_ref):
    x = x_ref[...].astype(jnp.float32)                        # (bn, H)

    # BatchNorm1d: full-batch stats were folded into scale/shift in the wrapper.
    h = x * scale_ref[...] + shift_ref[...]

    # Dropout #1 (keep_scale already folded into w1): single select.
    h = jnp.where(m1_ref[...] > 0, h, 0.0)

    # Linear(H -> 4H): bf16 operands, f32 accumulation on the MXU.
    pre = jnp.dot(h.astype(jnp.bfloat16), w1_ref[...],
                  preferred_element_type=jnp.float32) + b1_ref[...]

    # Fused ReLU + Dropout #2 (keep_scale folded into w2): one select over the
    # largest (bn, 4H) intermediate.
    a = jnp.where((m2_ref[...] > 0) & (pre > 0.0), pre, 0.0)

    # Linear(4H -> H) + residual add (f32).
    y = jnp.dot(a.astype(jnp.bfloat16), w2_ref[...],
                preferred_element_type=jnp.float32) + b2_ref[...]
    o_ref[...] = (y + x).astype(o_ref.dtype)


def residual_block_with_dropout(x, params, dropout_p, m1, m2, *, block_n=128):
    """Forward pass of ResidualBlockWithDropout (PyTorch training semantics).

    x:  (N, H) activations.
    params: gamma/beta (1,H); w1 (H,4H), b1 (1,4H), w2 (4H,H), b2 (1,H)
            (linear weights stored pre-transposed as (in, out)).
    m1: (N, H)  boolean keep-mask for dropout #1.
    m2: (N, 4H) boolean keep-mask for dropout #2.
    """
    N, H = x.shape
    H4 = 4 * H
    p = float(dropout_p)

    xf = x.astype(jnp.float32)

    # ---- Full-batch BatchNorm1d stats (training mode, biased variance),
    #      folded into a per-feature scale/shift pair (global reduction done
    #      once in plain JAX so the Pallas kernel can be tiled over N).
    mean = jnp.mean(xf, axis=0, keepdims=True)
    var = jnp.mean(jnp.square(xf - mean), axis=0, keepdims=True)
    scale = params["gamma"].astype(jnp.float32) * jax.lax.rsqrt(var + BN_EPS)
    shift = params["beta"].astype(jnp.float32) - mean * scale

    # ---- Fold inverted-dropout keep-scale into the weights; cast to bf16.
    keep_scale = 1.0 / (1.0 - p) if p > 0.0 else 1.0
    w1 = (params["w1"] * keep_scale).astype(jnp.bfloat16)
    w2 = (params["w2"] * keep_scale).astype(jnp.bfloat16)
    b1 = params["b1"].astype(jnp.float32)
    b2 = params["b2"].astype(jnp.float32)

    # ---- Batch tiling (pad N up to a multiple of the block size).
    block_n = max(8, min(_round_up(int(block_n), 8), _round_up(N, 8)))
    n_blocks = pl.cdiv(N, block_n)
    n_pad = n_blocks * block_n
    m1b = m1.astype(jnp.bfloat16)
    m2b = m2.astype(jnp.bfloat16)
    if n_pad != N:
        pad = ((0, n_pad - N), (0, 0))
        xf = jnp.pad(xf, pad)
        m1b = jnp.pad(m1b, pad)   # padded rows masked to 0; sliced off below
        m2b = jnp.pad(m2b, pad)

    # ---- VMEM budget: double-buffered activation/mask tiles + resident
    #      bf16 weights + in-kernel f32 intermediates, with headroom.
    vmem_bytes = (2 * block_n * H * 4          # x tiles
                  + 2 * block_n * H * 2        # m1 tiles (bf16)
                  + 2 * block_n * H4 * 2       # m2 tiles (bf16)
                  + 2 * block_n * H * 4        # out tiles
                  + 2 * 2 * H * H4 * 2         # w1 + w2 (bf16, resident)
                  + 4 * block_n * H4 * 4)      # f32 intermediates
    vmem_limit = int(min(64 << 20, max(int(vmem_bytes * 1.5), 16 << 20)))

    out = pl.pallas_call(
        _resblock_kernel,
        out_shape=jax.ShapeDtypeStruct((n_pad, H), jnp.float32),
        grid=(n_blocks,),
        in_specs=[
            pl.BlockSpec((block_n, H), lambda i: (i, 0)),    # x
            pl.BlockSpec((1, H), lambda i: (0, 0)),          # scale (resident)
            pl.BlockSpec((1, H), lambda i: (0, 0)),          # shift (resident)
            pl.BlockSpec((block_n, H), lambda i: (i, 0)),    # m1
            pl.BlockSpec((H, H4), lambda i: (0, 0)),         # w1 (resident)
            pl.BlockSpec((1, H4), lambda i: (0, 0)),         # b1 (resident)
            pl.BlockSpec((block_n, H4), lambda i: (i, 0)),   # m2
            pl.BlockSpec((H4, H), lambda i: (0, 0)),         # w2 (resident)
            pl.BlockSpec((1, H), lambda i: (0, 0)),          # b2 (resident)
        ],
        out_specs=pl.BlockSpec((block_n, H), lambda i: (i, 0)),
        compiler_params=pltpu.CompilerParams(
            dimension_semantics=("parallel",),
            vmem_limit_bytes=vmem_limit),
    )(xf, scale, shift, m1b, w1, b1, m2b, w2, b2)

    return out[:N].astype(x.dtype)


def init_params(key, hidden_size):
    """Deterministic init mirroring the PyTorch module's parameter shapes."""
    h4 = hidden_size * 4
    k1, k2, k3, k4 = jax.random.split(key, 4)
    # BatchNorm1d defaults: weight=1, bias=0.
    gamma = jnp.ones((1, hidden_size), jnp.float32)
    beta = jnp.zeros((1, hidden_size), jnp.float32)
    # Linear weights stored as (in, out) = torch weight transposed.
    bound1 = 1.0 / (hidden_size ** 0.5)
    w1 = jax.random.uniform(k1, (hidden_size, h4), jnp.float32, -bound1, bound1)
    b1 = jax.random.uniform(k2, (1, h4), jnp.float32, -bound1, bound1)
    bound2 = 1.0 / (h4 ** 0.5)
    w2 = jax.random.uniform(k3, (h4, hidden_size), jnp.float32, -bound2, bound2)
    b2 = jax.random.uniform(k4, (1, hidden_size), jnp.float32, -bound2, bound2)
    return dict(gamma=gamma, beta=beta, w1=w1, b1=b1, w2=w2, b2=b2)


def _reference(x, params, m1, m2, p):
    """Pure-JAX f32 reference with the same masks (PyTorch training forward)."""
    xf = x.astype(jnp.float32)
    mean = jnp.mean(xf, axis=0, keepdims=True)
    var = jnp.mean(jnp.square(xf - mean), axis=0, keepdims=True)
    xn = (xf - mean) / jnp.sqrt(var + BN_EPS) * params["gamma"] + params["beta"]
    s = 1.0 / (1.0 - p) if p > 0.0 else 1.0
    h = jnp.where(m1, xn, 0.0) * s
    a = jnp.maximum(h @ params["w1"] + params["b1"], 0.0)
    a = jnp.where(m2, a, 0.0) * s
    return a @ params["w2"] + params["b2"] + xf


if __name__ == "__main__":
    N, HIDDEN, DROPOUT = 256, 128, 0.1     # small but lane-dense shapes

    key = jax.random.PRNGKey(0)
    kx, kp, km1, km2 = jax.random.split(key, 4)
    x = jax.random.normal(kx, (N, HIDDEN), jnp.float32)
    params = init_params(kp, HIDDEN)
    m1 = jax.random.bernoulli(km1, 1.0 - DROPOUT, (N, HIDDEN))
    m2 = jax.random.bernoulli(km2, 1.0 - DROPOUT, (N, 4 * HIDDEN))

    out = residual_block_with_dropout(x, params, DROPOUT, m1, m2, block_n=128)
    jax.block_until_ready(out)

    ref = _reference(x, params, m1, m2, DROPOUT)
    assert out.shape == (N, HIDDEN)
    assert bool(jnp.all(jnp.isfinite(out)))
    max_err = float(jnp.max(jnp.abs(out - ref)))
    # bf16 matmul operands vs. f32 reference -> loose-ish tolerance.
    assert bool(jnp.allclose(out, ref, atol=5e-2, rtol=5e-2)), f"max|err|={max_err}"

    print("KERNEL_OK")
</pallas_src>

<mosaic_0001>
module attributes {stable_mosaic.version = 11 : i64} {
  func.func @_resblock_kernel(%arg0: i32, %arg1: memref<128x128xf32, #tpu.memory_space<vmem>>, %arg2: memref<1x128xf32, #tpu.memory_space<vmem>>, %arg3: memref<1x128xf32, #tpu.memory_space<vmem>>, %arg4: memref<128x128xbf16, #tpu.memory_space<vmem>>, %arg5: memref<128x512xbf16, #tpu.memory_space<vmem>>, %arg6: memref<1x512xf32, #tpu.memory_space<vmem>>, %arg7: memref<128x512xbf16, #tpu.memory_space<vmem>>, %arg8: memref<512x128xbf16, #tpu.memory_space<vmem>>, %arg9: memref<1x128xf32, #tpu.memory_space<vmem>>, %arg10: memref<128x128xf32, #tpu.memory_space<vmem>>) attributes {dimension_semantics = [#tpu.dimension_semantics<parallel>], iteration_bounds = array<i64: 2>, scalar_prefetch = 0 : i64, scratch_operands = 0 : i64, tpu.core_type = #tpu.core_type<tc>, window_params = [{transform_indices = @transform_0, window_bounds = array<i64: 128, 128>}, {pipeline_mode = #tpu.pipeline_mode<synchronous>, transform_indices = @transform_1, window_bounds = array<i64: 1, 128>}, {pipeline_mode = #tpu.pipeline_mode<synchronous>, transform_indices = @transform_2, window_bounds = array<i64: 1, 128>}, {transform_indices = @transform_3, window_bounds = array<i64: 128, 128>}, {pipeline_mode = #tpu.pipeline_mode<synchronous>, transform_indices = @transform_4, window_bounds = array<i64: 128, 512>}, {pipeline_mode = #tpu.pipeline_mode<synchronous>, transform_indices = @transform_5, window_bounds = array<i64: 1, 512>}, {transform_indices = @transform_6, window_bounds = array<i64: 128, 512>}, {pipeline_mode = #tpu.pipeline_mode<synchronous>, transform_indices = @transform_7, window_bounds = array<i64: 512, 128>}, {pipeline_mode = #tpu.pipeline_mode<synchronous>, transform_indices = @transform_8, window_bounds = array<i64: 1, 128>}, {transform_indices = @transform_9, window_bounds = array<i64: 128, 128>}]} {
    %c0 = arith.constant 0 : index
    %c0_0 = arith.constant 0 : index
    %0 = vector.load %arg1[%c0, %c0_0] : memref<128x128xf32, #tpu.memory_space<vmem>>, vector<128x128xf32>
    %c0_1 = arith.constant 0 : index
    %c0_2 = arith.constant 0 : index
    %1 = vector.load %arg2[%c0_1, %c0_2] : memref<1x128xf32, #tpu.memory_space<vmem>>, vector<1x128xf32>
    %2 = vector.broadcast %1 : vector<1x128xf32> to vector<128x128xf32>
    %3 = arith.mulf %0, %2 : vector<128x128xf32>
    %c0_3 = arith.constant 0 : index
    %c0_4 = arith.constant 0 : index
    %4 = vector.load %arg3[%c0_3, %c0_4] : memref<1x128xf32, #tpu.memory_space<vmem>>, vector<1x128xf32>
    %5 = vector.broadcast %4 : vector<1x128xf32> to vector<128x128xf32>
    %6 = arith.addf %3, %5 : vector<128x128xf32>
    %c0_5 = arith.constant 0 : index
    %c0_6 = arith.constant 0 : index
    %7 = vector.load %arg4[%c0_5, %c0_6] : memref<128x128xbf16, #tpu.memory_space<vmem>>, vector<128x128xbf16>
    %cst = arith.constant 0.000000e+00 : bf16
    %8 = vector.broadcast %cst : bf16 to vector<128x128xbf16>
    %9 = arith.cmpf ogt, %7, %8 : vector<128x128xbf16>
    %cst_7 = arith.constant 0.000000e+00 : f32
    %10 = vector.broadcast %cst_7 : f32 to vector<128x128xf32>
    %11 = arith.select %9, %6, %10 : vector<128x128xi1>, vector<128x128xf32>
    %12 = arith.truncf %11 : vector<128x128xf32> to vector<128x128xbf16>
    %c0_8 = arith.constant 0 : index
    %c0_9 = arith.constant 0 : index
    %13 = vector.load %arg5[%c0_8, %c0_9] : memref<128x512xbf16, #tpu.memory_space<vmem>>, vector<128x512xbf16>
    %cst_10 = arith.constant dense<0.000000e+00> : vector<128x512xf32>
    %14 = tpu.matmul %12, %13, %cst_10 {dimension_numbers = #tpu.dot_dimension_numbers<[1], [0], [0], [1], [0, 0, 1, 1], [], []>} : vector<128x128xbf16>, vector<128x512xbf16>, vector<128x512xf32> -> vector<128x512xf32>
    %c0_11 = arith.constant 0 : index
    %c0_12 = arith.constant 0 : index
    %15 = vector.load %arg6[%c0_11, %c0_12] : memref<1x512xf32, #tpu.memory_space<vmem>>, vector<1x512xf32>
    %16 = vector.broadcast %15 : vector<1x512xf32> to vector<128x512xf32>
    %17 = arith.addf %14, %16 : vector<128x512xf32>
    %c0_13 = arith.constant 0 : index
    %c0_14 = arith.constant 0 : index
    %18 = vector.load %arg7[%c0_13, %c0_14] : memref<128x512xbf16, #tpu.memory_space<vmem>>, vector<128x512xbf16>
    %cst_15 = arith.constant 0.000000e+00 : bf16
    %19 = vector.broadcast %cst_15 : bf16 to vector<128x512xbf16>
    %20 = arith.cmpf ogt, %18, %19 : vector<128x512xbf16>
    %cst_16 = arith.constant 0.000000e+00 : f32
    %21 = vector.broadcast %cst_16 : f32 to vector<128x512xf32>
    %22 = arith.cmpf ogt, %17, %21 : vector<128x512xf32>
    %23 = arith.andi %20, %22 : vector<128x512xi1>
    %cst_17 = arith.constant 0.000000e+00 : f32
    %24 = vector.broadcast %cst_17 : f32 to vector<128x512xf32>
    %25 = arith.select %23, %17, %24 : vector<128x512xi1>, vector<128x512xf32>
    %26 = arith.truncf %25 : vector<128x512xf32> to vector<128x512xbf16>
    %c0_18 = arith.constant 0 : index
    %c0_19 = arith.constant 0 : index
    %27 = vector.load %arg8[%c0_18, %c0_19] : memref<512x128xbf16, #tpu.memory_space<vmem>>, vector<512x128xbf16>
    %cst_20 = arith.constant dense<0.000000e+00> : vector<128x128xf32>
    %28 = tpu.matmul %26, %27, %cst_20 {dimension_numbers = #tpu.dot_dimension_numbers<[1], [0], [0], [1], [0, 0, 1, 1], [], []>} : vector<128x512xbf16>, vector<512x128xbf16>, vector<128x128xf32> -> vector<128x128xf32>
    %c0_21 = arith.constant 0 : index
    %c0_22 = arith.constant 0 : index
    %29 = vector.load %arg9[%c0_21, %c0_22] : memref<1x128xf32, #tpu.memory_space<vmem>>, vector<1x128xf32>
    %30 = vector.broadcast %29 : vector<1x128xf32> to vector<128x128xf32>
    %31 = arith.addf %28, %30 : vector<128x128xf32>
    %32 = arith.addf %31, %0 : vector<128x128xf32>
    %c0_23 = arith.constant 0 : index
    %c0_24 = arith.constant 0 : index
    %33 = vector.load %arg10[%c0_23, %c0_24] : memref<128x128xf32, #tpu.memory_space<vmem>>, vector<128x128xf32>
    tpu.vector_store %arg10[%c0_23, %c0_24], %32 {strides = array<i32>} : memref<128x128xf32, #tpu.memory_space<vmem>>, vector<128x128xf32>,
    return
  }
  func.func @transform_0(%arg0: i32) -> (i32, i32) {
    %c0_i32 = arith.constant 0 : i32
    %c0_i32_0 = arith.constant 0 : i32
    return %arg0, %c0_i32 : i32, i32
  }
  func.func @transform_1(%arg0: i32) -> (i32, i32) {
    %c0_i32 = arith.constant 0 : i32
    %c0_i32_0 = arith.constant 0 : i32
    %c0_i32_1 = arith.constant 0 : i32
    return %c0_i32, %c0_i32_0 : i32, i32
  }
  func.func @transform_2(%arg0: i32) -> (i32, i32) {
    %c0_i32 = arith.constant 0 : i32
    %c0_i32_0 = arith.constant 0 : i32
    %c0_i32_1 = arith.constant 0 : i32
    return %c0_i32, %c0_i32_0 : i32, i32
  }
  func.func @transform_3(%arg0: i32) -> (i32, i32) {
    %c0_i32 = arith.constant 0 : i32
    %c0_i32_0 = arith.constant 0 : i32
    return %arg0, %c0_i32 : i32, i32
  }
  func.func @transform_4(%arg0: i32) -> (i32, i32) {
    %c0_i32 = arith.constant 0 : i32
    %c0_i32_0 = arith.constant 0 : i32
    %c0_i32_1 = arith.constant 0 : i32
    return %c0_i32, %c0_i32_0 : i32, i32
  }
  func.func @transform_5(%arg0: i32) -> (i32, i32) {
    %c0_i32 = arith.constant 0 : i32
    %c0_i32_0 = arith.constant 0 : i32
    %c0_i32_1 = arith.constant 0 : i32
    return %c0_i32, %c0_i32_0 : i32, i32
  }
  func.func @transform_6(%arg0: i32) -> (i32, i32) {
    %c0_i32 = arith.constant 0 : i32
    %c0_i32_0 = arith.constant 0 : i32
    return %arg0, %c0_i32 : i32, i32
  }
  func.func @transform_7(%arg0: i32) -> (i32, i32) {
    %c0_i32 = arith.constant 0 : i32
    %c0_i32_0 = arith.constant 0 : i32
    %c0_i32_1 = arith.constant 0 : i32
    return %c0_i32, %c0_i32_0 : i32, i32
  }
  func.func @transform_8(%arg0: i32) -> (i32, i32) {
    %c0_i32 = arith.constant 0 : i32
    %c0_i32_0 = arith.constant 0 : i32
    %c0_i32_1 = arith.constant 0 : i32
    return %c0_i32, %c0_i32_0 : i32, i32
  }
  func.func @transform_9(%arg0: i32) -> (i32, i32) {
    %c0_i32 = arith.constant 0 : i32
    %c0_i32_0 = arith.constant 0 : i32
    return %arg0, %c0_i32 : i32, i32
  }
}

</mosaic_0001>

<bundles_post_ra>
// kernel: tpu_custom_call.1
= control target key start
LH: loop header
LB: loop body
LE: loop exit
PB: predicated region body
PF: predicated region fallthrough
CT: control target
= control target key end

     0   :  { %s4732_s0 = inlined_call_operand.hbm [shape: f32[256,128], index: 0, kind: input, shape index: {}]   ;;  %s4733_s1 = inlined_call_operand.vmem [shape: f32[1,128], index: 1, kind: input, shape index: {}]   ;;  %s4734_s2 = inlined_call_operand.vmem [shape: f32[1,128], index: 2, kind: input, shape index: {}]   ;;  %s4735_s3 = inlined_call_operand.hbm [shape: bf16[256,128], index: 3, kind: input, shape index: {}]   ;;  %s4736_s4 = inlined_call_operand.hbm [shape: bf16[128,512], index: 4, kind: input, shape index: {}]   ;;  %s4737_s5 = inlined_call_operand.vmem [shape: f32[1,512], index: 5, kind: input, shape index: {}]   ;;  %s4738_s6 = inlined_call_operand.hbm [shape: bf16[256,512], index: 6, kind: input, shape index: {}]   ;;  %s4739_s7 = inlined_call_operand.hbm [shape: bf16[512,128], index: 7, kind: input, shape index: {}]   ;;  %s4740_s8 = inlined_call_operand.vmem [shape: f32[1,128], index: 8, kind: input, shape index: {}]   ;;  %s4741_s9 = inlined_call_operand.hbm [shape: f32[256,128], index: 9, kind: output, shape index: {}]  }
   0x1   :  { %4755 = sst [smem:[#allocation22_spill]] %s4732_s0 }
   0x2   :  { %4756 = sst [smem:[#allocation23_spill]] %s4736_s4 }
   0x3   :  { %4757 = sst [smem:[#allocation24_spill]] %s4739_s7 }
   0x4   :  { %4758 = sst [smem:[#allocation25_spill]] %s4741_s9 }
   0x5   :  { %14 = vsyncpa [#allocation3], 0 }
   0x6   :  { %16 = vsyncpa [#allocation3 + $0x1], 0 }
   0x7   :  { %17 = vsyncpa [#allocation6], 0 }
   0x8   :  { %19 = vsyncpa [#allocation6 + $0x1], 0 }
   0x9   :  { %20 = vsyncpa [#allocation9], 0 }
   0xa   :  { %22 = vsyncpa [#allocation9 + $0x1], 0 }
   0xb   :  { %23 = vsyncpa [#allocation4], 0 }
   0xc   :  { %25 = vsyncpa [#allocation4 + $0x1], 0  ;;  %s3009_s30 = smov 0   ;;  %s3011_s10 = smov 0  }
   0xd   :  { %s3013_s11 = smov 0   ;;  %s3015_s12 = smov 0  }
   0xe LB: > { %4759 = sst [smem:[#allocation18_spill]] %s2930_s30  ;;  %s3030_s13 = sadd.s32 4294967295, %s2942_s12   ;;  %s2942_s12 = sphi %s3015_s12, %s4967_s12   ;;  %s2938_s11 = sphi %s3013_s11, %s4971_s11   ;;  %s2934_s10 = sphi %s3011_s10, %s4970_s10   ;;  %s2930_s30 = sphi %s3009_s30, %s4969_s30  }
   0xf   : > { %s2161_s14 = sadd.s32 4294967294, %s2942_s12   ;;  %s3034_s15 = sadd.s32 1, %s2942_s12  }
  0x10   : > { %4760 = sst [smem:[#allocation19_spill]] %s3034_s15  ;;  %s38_s16 = sadd.s32 1, %s2938_s11 }
  0x11   : > { %s35_s17 = ssub.s32 %s2942_s12, %s3034_s15  ;;  %p45_p0 = scmp.ne.s32.totalorder %s2938_s11, %s2934_s10 }
  0x12   : > { %p36_p1 = scmp.eq.s32.totalorder %s35_s17, 0  ;;  %p46_p2 = scmp.eq.s32.totalorder %s2942_s12, 0 }
  0x13   : > { %p51_p3 = scmp.ne.s32.totalorder %s2934_s10, %s2930_s30  ;;  %p4744_p4 = scmp.eq.s32.totalorder %s3030_s13, 0 }
  0x14   : > { %s3046_s18 = scalar_select %p36_p1, %s2938_s11, %s38_s16  }
  0x15   : > { %p3048_p5 = por %p46_p2, %p45_p0  ;;  %p3054_p6 = por %p4744_p4, %p51_p3 }
  0x16   : > { %4761 = sst [smem:[#allocation20_spill]] %s3046_s18  ;;  %p253_p7 = scmp.eq.s32.totalorder %s3030_s13, 1 }
  0x17   : > { %s4762_s19 = scalar_select %p3048_p5, 1, 0 }
  0x18   : > { %s4763_s20 = scalar_select %p3054_p6, 1, 0 }
  0x19   : > { %p259_p8 = scmp.eq.s32.totalorder %s2161_s14, 1  ;;  %p2162_p9 = scmp.ge.s32.totalorder %s2942_s12, 1 }
  0x1a   : > { %p266_p10 = scmp.lt.s32.totalorder %s2942_s12, 3  ;;  %p3061_p11 = por %p253_p7, %p45_p0 }
  0x1b   : > { %p3065_p12 = por %p259_p8, %p51_p3  ;;  %s2944_s24 = smov [#allocation7]  }
  0x1c   : > { %s4764_s21 = scalar_select %p3061_p11, 1, 0 }
  0x1d   : > { %s4765_s22 = scalar_select %p3065_p12, 1, 0 }
  0x1e   : > { %p3069_p13 = pnand %p2162_p9, %p266_p10  ;;  %s284_s25 = sshll.u32 %s2944_s24, 4  ;;  %s285_s25 = int_to_ptr.vmem [resolvable:$true] %s284_s25 }
  0x1f   : > { %4766 = sst [smem:[#allocation21_spill]] %s4765_s22  ;;  %s2945_s27 = smov [#allocation10]  }
  0x20   : > { %s4767_s23 = scalar_select %p3069_p13, 1, 0 }
  0x21   : > { %p2548_p1 = pneg %p3069_p13  ;;  %s300_s28 = sshll.u32 %s2945_s27, 4  ;;  %s301_s28 = int_to_ptr.vmem [resolvable:$true] %s300_s28 }
  0x22   : > { %s4769_s4 = sld [smem:[#allocation23_spill]] }
  0x23   : > { %p3077_p2 = pnand %p2548_p1, %p4744_p4 }
  0x25   : > { %p2716_p7 = pneg %p3077_p2 }
  0x28   : > { %s2714_s16 = scalar_lea.hbm %s4769_s4, 4096 }
  0x29   : > { %p2715_p3 = scmp.ne.s32.totalorder %s4769_s4, %s2714_s16  ;;  %p2721_p10 = scmp.lt.u32.totalorder %s2714_s16, %s4769_s4 }
  0x2b   : > { %p2717_p8 = pnand %p2716_p7, %p2715_p3 }
  0x2d   : > { %p2718_p9 = pneg %p2717_p8 }
  0x2f   : > { %p2723_p1 = pnand %p2721_p10, %p2718_p9 }
  0x31   : > { %2726 = shalt.err (!%p2723_p1)
}
  0x32   : > { %s2727_s27 = scalar_lea.vmem %s285_s25, 4096  ;;  %p2735_p11 = scmp.lt.s32.totalorder %s285_s25, %s285_s25 }
  0x33   : > { %p2728_p0 = scmp.ne.s32.totalorder %s285_s25, %s2727_s27  ;;  %p2736_p6 = scmp.lt.s32.totalorder %s2727_s27, %s2727_s27 }
  0x35   : > { %p2730_p4 = pnand %p2728_p0, %p2716_p7  ;;  %p2737_p13 = por %p2736_p6, %p2735_p11 }
  0x37   : > { %p2731_p12 = pneg %p2730_p4 }
  0x39   : > { %p2738_p5 = pnand %p2737_p13, %p2731_p12 }
  0x3b   : > { %2741 = shalt.err (!%p2738_p5)
}
  0x3c   : > { %s4751_s18 = smov 256   ;;  %s4752_s29 = smov 16  }
  0x3d   : > { %2551 = dma.hbm_to_vmem [thread:$0]  (!%p3077_p2), %s4769_s4, 4096, %s285_s25, [#allocation6], %s4751_s18, %s4751_s18, %s4752_s29  }
  0x3e   : > { %s4770_s7 = sld [smem:[#allocation24_spill]] }
  0x44   : > { %s2742_s24 = scalar_lea.hbm %s4770_s7, 4096 }
  0x45   : > { %p2743_p4 = scmp.ne.s32.totalorder %s4770_s7, %s2742_s24  ;;  %p2749_p11 = scmp.lt.u32.totalorder %s2742_s24, %s4770_s7 }
  0x47   : > { %p2745_p5 = pnand %p2743_p4, %p2716_p7 }
  0x49   : > { %p2746_p6 = pneg %p2745_p5 }
  0x4b   : > { %p2751_p12 = pnand %p2749_p11, %p2746_p6 }
  0x4d   : > { %2754 = shalt.err (!%p2751_p12)
}
  0x4e   : > { %s2755_s25 = scalar_lea.vmem %s301_s28, 4096  ;;  %p2763_p8 = scmp.lt.s32.totalorder %s301_s28, %s301_s28 }
  0x4f   : > { %p2756_p13 = scmp.ne.s32.totalorder %s301_s28, %s2755_s25  ;;  %p2764_p9 = scmp.lt.s32.totalorder %s2755_s25, %s2755_s25 }
  0x51   : > { %p2758_p0 = pnand %p2756_p13, %p2716_p7  ;;  %p2765_p10 = por %p2764_p9, %p2763_p8 }
  0x53   : > { %p2759_p3 = pneg %p2758_p0 }
  0x55   : > { %p2766_p1 = pnand %p2765_p10, %p2759_p3 }
  0x57   : > { %2769 = shalt.err (!%p2766_p1)
}
  0x58   : > { %s4753_s22 = smov 64   ;;  %s4754_s9 = smov 4  }
  0x59   : > { %2554 = dma.hbm_to_vmem [thread:$0]  (!%p3077_p2), %s4770_s7, 4096, %s301_s28, [#allocation9], %s4753_s22, %s4753_s22, %s4754_s9  }
  0x5a   : > { %p2571_p7 = scmp.lt.s32.totalorder %s2942_s12, 2  ;;  %s3132_s14 = sand.u32 1, %s2938_s11  }
  0x5b   : > { %s2166_s16 = sshll.u32 %s3132_s14, 7  ;;  %s2399_s17 = sshll.u32 %s2942_s12, 11 }
  0x5c   : > { %s4771_s0 = sld [smem:[#allocation22_spill]]  ;;  %s321_s26 = scalar_lea.vmem [#allocation2], %s2166_s16 }
  0x5d   : > { %s328_s18 = sshll.u32 %s321_s26, 4  ;;  %p4772_p2 = scmp.ne.s32.totalorder %s4762_s19, 0  ;;  %s3141_s18 = int_to_ptr.vmem [resolvable:$true] %s328_s18 }
  0x5e   : > { %s318_s15 = scalar_lea.sflag [#allocation3], %s3132_s14 }
  0x5f   : > { %p3145_p4 = pnand %p2571_p7, %p4772_p2 }
  0x61   : > { %p3155_p6 = pneg %p3145_p4 }
  0x62   : > { %s3139_s25 = scalar_lea.hbm %s4771_s0, %s2399_s17  ;;  %s2775_s24 = scalar_lea.hbm %s4771_s0, 4096 }
  0x63   : > { %s2770_s29 = scalar_lea.hbm %s3139_s25, 2048  ;;  %p2776_p13 = scmp.lt.u32.totalorder %s3139_s25, %s4771_s0 }
  0x64   : > { %p2771_p5 = scmp.ne.s32.totalorder %s3139_s25, %s2770_s29  ;;  %p2777_p0 = scmp.lt.u32.totalorder %s2775_s24, %s2770_s29 }
  0x65   : > { %p2779_p8 = scmp.lt.u32.totalorder %s2770_s29, %s3139_s25 }
  0x66   : > { %p2773_p11 = pnand %p3155_p6, %p2771_p5  ;;  %p2778_p3 = por %p2777_p0, %p2776_p13 }
  0x68   : > { %p2774_p12 = pneg %p2773_p11  ;;  %p2780_p9 = por %p2779_p8, %p2778_p3 }
  0x6a   : > { %p2781_p10 = pnand %p2780_p9, %p2774_p12 }
  0x6c   : > { %2784 = shalt.err (!%p2781_p10)
}
  0x6d   : > { %s2785_s22 = scalar_lea.vmem %s3141_s18, 2048  ;;  %s2950_s16 = smov [#allocation2]  }
  0x6e   : > { %p2786_p1 = scmp.ne.s32.totalorder %s3141_s18, %s2785_s22  ;;  %s2790_s19 = sshll.u32 %s2950_s16, 4  ;;  %s2791_s19 = int_to_ptr.vmem [resolvable:$false] %s2790_s19 }
  0x6f   : > { %s2792_s27 = scalar_lea.vmem %s2791_s19, 4096  ;;  %p2793_p5 = scmp.lt.s32.totalorder %s3141_s18, %s2791_s19 }
  0x70   : > { %p2788_p7 = pnand %p2786_p1, %p3155_p6  ;;  %p2794_p11 = scmp.lt.s32.totalorder %s2792_s27, %s2785_s22 }
  0x72   : > { %p2789_p2 = pneg %p2788_p7  ;;  %p2795_p13 = por %p2794_p11, %p2793_p5 }
  0x74   : > { %p2796_p0 = pnand %p2795_p13, %p2789_p2 }
  0x76   : > { %2799 = shalt.err (!%p2796_p0)
}
  0x77   : > { %s2951_s29 = smov 128   ;;  %s2952_s24 = smov 8  }
  0x78   : > { %2558 = dma.hbm_to_vmem [thread:$0]  (!%p3145_p4), %s3139_s25, 2048, %s3141_s18, %s318_s15, %s2951_s29, %s2951_s29, %s2952_s24  }
  0x79   : > { %s2169_s26 = sshll.u32 %s3132_s14, 6  ;;  %s2400_s16 = sshll.u32 %s2942_s12, 10 }
  0x7a   : > { %s3185_s27 = scalar_lea.hbm %s4735_s3, %s2400_s16  ;;  %s342_s9 = scalar_lea.vmem [#allocation5], %s2169_s26 }
  0x7b   : > { %s349_s30 = sshll.u32 %s342_s9, 4  ;;  %s4775_s0 = sand.u32 1, %s2942_s12   ;;  %s3187_s30 = int_to_ptr.vmem [resolvable:$true] %s349_s30 }
  0x7c   : > { %s3191_s4 = scalar_lea.sflag [#allocation6], %s4775_s0  ;;  %s2800_s7 = scalar_lea.hbm %s3185_s27, 1024 }
  0x7d   : > { %p2801_p12 = scmp.ne.s32.totalorder %s3185_s27, %s2800_s7  ;;  %s2805_s15 = scalar_lea.hbm %s4735_s3, 2048 }
  0x7e   : > { %p2806_p9 = scmp.lt.u32.totalorder %s3185_s27, %s4735_s3  ;;  %p2807_p10 = scmp.lt.u32.totalorder %s2805_s15, %s2800_s7 }
  0x7f   : > { %p2803_p3 = pnand %p2801_p12, %p3155_p6  ;;  %p2809_p7 = scmp.lt.u32.totalorder %s2800_s7, %s3185_s27 }
  0x80   : > { %p2808_p1 = por %p2807_p10, %p2806_p9 }
  0x81   : > { %p2804_p8 = pneg %p2803_p3 }
  0x82   : > { %p2810_p2 = por %p2809_p7, %p2808_p1 }
  0x84   : > { %p2811_p5 = pnand %p2810_p2, %p2804_p8 }
  0x86   : > { %2814 = shalt.err (!%p2811_p5)
}
  0x87   : > { %s2815_s0 = scalar_lea.vmem %s3187_s30, 1024  ;;  %s2953_s9 = smov [#allocation5]  }
  0x88   : > { %p2816_p11 = scmp.ne.s32.totalorder %s3187_s30, %s2815_s0  ;;  %s2820_s26 = sshll.u32 %s2953_s9, 4  ;;  %s2821_s26 = int_to_ptr.vmem [resolvable:$false] %s2820_s26 }
  0x89   : > { %s2822_s16 = scalar_lea.vmem %s2821_s26, 2048  ;;  %p2823_p12 = scmp.lt.s32.totalorder %s3187_s30, %s2821_s26 }
  0x8a   : > { %p2818_p13 = pnand %p2816_p11, %p3155_p6  ;;  %p2824_p3 = scmp.lt.s32.totalorder %s2822_s16, %s2815_s0 }
  0x8c   : > { %p2819_p0 = pneg %p2818_p13  ;;  %p2825_p9 = por %p2824_p3, %p2823_p12 }
  0x8e   : > { %p2826_p10 = pnand %p2825_p9, %p2819_p0 }
  0x90   : > { %2829 = shalt.err (!%p2826_p10)
}
  0x91   : > { %s4776_s7 = smov 4   ;;  %s4777_s19 = smov 64  }
  0x92   : > { %2561 = dma.hbm_to_vmem [thread:$0]  (!%p3145_p4), %s3185_s27, 1024, %s3187_s30, %s3191_s4, %s4777_s19, %s4777_s19, %s4776_s7  }
  0x93   : > { %s2172_s22 = sshll.u32 %s3132_s14, 8  ;;  %s2402_s18 = sshll.u32 %s2942_s12, 12 }
  0x94   : > { %s3223_s29 = scalar_lea.hbm %s4738_s6, %s2402_s18  ;;  %s363_s24 = scalar_lea.vmem [#allocation8], %s2172_s22 }
  0x95   : > { %s371_s0 = sshll.u32 %s363_s24, 4  ;;  %s4778_s9 = sand.u32 1, %s2942_s12   ;;  %s3225_s0 = int_to_ptr.vmem [resolvable:$true] %s371_s0 }
  0x96   : > { %s3229_s26 = scalar_lea.sflag [#allocation9], %s4778_s9  ;;  %s2830_s16 = scalar_lea.hbm %s3223_s29, 4096 }
  0x97   : > { %p2831_p8 = scmp.ne.s32.totalorder %s3223_s29, %s2830_s16  ;;  %s2835_s30 = scalar_lea.hbm %s4738_s6, 8192 }
  0x98   : > { %p2836_p2 = scmp.lt.u32.totalorder %s3223_s29, %s4738_s6  ;;  %p2837_p5 = scmp.lt.u32.totalorder %s2835_s30, %s2830_s16 }
  0x99   : > { %p2833_p1 = pnand %p2831_p8, %p3155_p6  ;;  %p2839_p13 = scmp.lt.u32.totalorder %s2830_s16, %s3223_s29 }
  0x9a   : > { %p2838_p11 = por %p2837_p5, %p2836_p2 }
  0x9b   : > { %p2834_p7 = pneg %p2833_p1 }
  0x9c   : > { %p2840_p0 = por %p2839_p13, %p2838_p11 }
  0x9e   : > { %p2841_p12 = pnand %p2840_p0, %p2834_p7 }
  0xa0   : > { %2844 = shalt.err (!%p2841_p12)
}
  0xa1   : > { %s2845_s19 = scalar_lea.vmem %s3225_s0, 4096  ;;  %s2954_s22 = smov [#allocation8]  }
  0xa2   : > { %p2846_p3 = scmp.ne.s32.totalorder %s3225_s0, %s2845_s19  ;;  %s2850_s18 = sshll.u32 %s2954_s22, 4  ;;  %s2851_s18 = int_to_ptr.vmem [resolvable:$false] %s2850_s18 }
  0xa3   : > { %s2852_s25 = scalar_lea.vmem %s2851_s18, 8192  ;;  %p2853_p8 = scmp.lt.s32.totalorder %s3225_s0, %s2851_s18 }
  0xa4   : > { %p2848_p9 = pnand %p2846_p3, %p3155_p6  ;;  %p2854_p1 = scmp.lt.s32.totalorder %s2852_s25, %s2845_s19 }
  0xa6   : > { %p2849_p10 = pneg %p2848_p9  ;;  %p2855_p2 = por %p2854_p1, %p2853_p8 }
  0xa8   : > { %p2856_p5 = pnand %p2855_p2, %p2849_p10 }
  0xaa   : > { %2859 = shalt.err (!%p2856_p5)
}
  0xab   : > { %s4779_s15 = smov 16   ;;  %s4780_s24 = smov 256  }
  0xac   : > { %2564 = dma.hbm_to_vmem [thread:$0]  (!%p3145_p4), %s3223_s29, 4096, %s3225_s0, %s3229_s26, %s4780_s24, %s4780_s24, %s4779_s15  }
  0xad   : > { %p4781_p6 = scmp.ne.s32.totalorder %s4767_s23, 0 }
  0xae   : > { %s3259_s17 = sand.u32 (!%p4781_p6), 1, %s2934_s10   ;;  %p4782_p7 = scmp.ne.s32.totalorder (!%p4781_p6), %s4763_s20, 0 }
  0xaf   : > { %383 = sbr.rel (%p4781_p6) target bundleno = 782 (0x30e), region = 56  ;;  %s2177_s9 = sshll.u32 (!%p4781_p6), %s3259_s17, 7 }
  0xb0   : > { %s386_s16 = scalar_lea.sflag (!%p4781_p6), [#allocation3], %s3259_s17  ;;  %s3265_s28 = scalar_lea.vmem (!%p4781_p6), [#allocation2], %s2177_s9 }
  0xb6   : > { %2905 = dma.done.wait (%p4782_p7), %s386_s16, 2048  }
  0xb7   : > { %2907 = vsyncadd (%p4782_p7), %s386_s16, 4294965248  ;;  %s394_s23 = sand.u32 1, %s3030_s13   ;;  %s2178_s29 = sshll.u32 %s3259_s17, 6 }
  0xb8   : > { %s395_s0 = scalar_lea.sflag [#allocation6], %s394_s23  ;;  %s3273_s26 = scalar_lea.vmem [#allocation5], %s2178_s29 }
  0xb9   : > { %2909 = dma.done.wait (%p4782_p7), %s395_s0, 1024  }
  0xba   : > { %2911 = vsyncadd (%p4782_p7), %s395_s0, 4294966272  ;;  %p4783_p4 = scmp.eq.s32.totalorder %s3030_s13, 0 }
  0xbc   : > { %2913 = dma.done.wait (%p4783_p4), [#allocation6], 4096   ;;  %p4784_p11 = pmov %p4783_p4 }
  0xbd   : > { %s2180_s4 = sshll.u32 %s3259_s17, 8  ;;  %s408_s14 = scalar_lea.sflag [#allocation9], %s394_s23 }
  0xbe   : > { %2915 = vsyncadd (%p4784_p11), [#allocation6], 4294963200  ;;  %s3284_s30 = scalar_lea.vmem [#allocation8], %s2180_s4 }
  0xbf   : > { %2917 = dma.done.wait (%p4782_p7), %s408_s14, 4096  }
  0xc0   : > { %2919 = vsyncadd (%p4782_p7), %s408_s14, 4294963200  ;;  %p4785_p13 = pmov %p4783_p4 }
  0xc1   : > { %p4786_p0 = pmov %p4783_p4 }
  0xc2   : > { %2921 = dma.done.wait (%p4785_p13), [#allocation9], 4096  }
  0xc3   : > { %2923 = vsyncadd (%p4786_p0), [#allocation9], 4294963200  ;;  %v2955_v0 = vmov 0   ;;  %v2618_v1 = vld [vmem:[#allocation7 + $0x4] ss:$16 sps:$4 sm:$0xff]   ;;  %v468_v28 = vld [vmem:[%s3265_s28 + $0x8] sm:$0xff] }
  0xc4   : > { %879 = vmatprep.mubr.bf16.mxu0 %v2955_v0  ;;  %992 = vmatprep.mubr.bf16.mxu1 %v2955_v0  ;;  %v2620_v2 = vld [vmem:[#allocation7 + $0xc] ss:$16 sps:$4 sm:$0xff]   ;;  %v2622_v3 = vld [vmem:[#allocation7] ss:$16 sps:$4 sm:$0xff]   ;;  %v2623_v4 = vld [vmem:[#allocation7 + $0x8] ss:$16 sps:$4 sm:$0xff]  }
  0xc5   : > { %847 = vmatprep.subr.bf16.mxu0 %v2618_v1  ;;  %960 = vmatprep.subr.bf16.mxu1 %v2620_v2  ;;  %v2624_v5 = vld [vmem:[#allocation7 + $0x24] ss:$16 sps:$4 sm:$0xff]   ;;  %v2626_v6 = vld [vmem:[#allocation7 + $0x2c] ss:$16 sps:$4 sm:$0xff]   ;;  %v2628_v7 = vld [vmem:[#allocation7 + $0x20] ss:$16 sps:$4 sm:$0xff]  }
  0xc6   : > { %848 = vmatpush1.bf16.msra.mxu0 %v2622_v3  ;;  %961 = vmatpush1.bf16.msra.mxu1 %v2623_v4  ;;  %v2629_v8 = vld [vmem:[#allocation7 + $0x28] ss:$16 sps:$4 sm:$0xff]   ;;  %v2630_v9 = vld [vmem:[#allocation7 + $0x44] ss:$16 sps:$4 sm:$0xff]   ;;  %v2632_v10 = vld [vmem:[#allocation7 + $0x4c] ss:$16 sps:$4 sm:$0xff]  }
  0xc7   : > { %849 = vmatprep.subr.bf16.mxu0 %v2624_v5  ;;  %962 = vmatprep.subr.bf16.mxu1 %v2626_v6  ;;  %v2634_v11 = vld [vmem:[#allocation7 + $0x40] ss:$16 sps:$4 sm:$0xff]   ;;  %v2635_v12 = vld [vmem:[#allocation7 + $0x48] ss:$16 sps:$4 sm:$0xff]   ;;  %v2636_v13 = vld [vmem:[#allocation7 + $0x64] ss:$16 sps:$4 sm:$0xff]  }
  0xc8   : > { %v2638_v14 = vld [vmem:[#allocation7 + $0x6c] ss:$16 sps:$4 sm:$0xff]   ;;  %v2640_v15 = vld [vmem:[#allocation7 + $0x60] ss:$16 sps:$4 sm:$0xff]   ;;  %v2641_v16 = vld [vmem:[#allocation7 + $0x68] ss:$16 sps:$4 sm:$0xff]  }
  0xc9   : > { %v2642_v17 = vld [vmem:[#allocation7 + $0x84] ss:$16 sps:$4 sm:$0xff]   ;;  %v2644_v18 = vld [vmem:[#allocation7 + $0x8c] ss:$16 sps:$4 sm:$0xff]   ;;  %v2646_v19 = vld [vmem:[#allocation7 + $0x80] ss:$16 sps:$4 sm:$0xff]  }
  0xca   : > { %850 = vmatpush1.bf16.msra.mxu0 %v2628_v7  ;;  %963 = vmatpush1.bf16.msra.mxu1 %v2629_v8  ;;  %v2647_v20 = vld [vmem:[#allocation7 + $0x88] ss:$16 sps:$4 sm:$0xff]   ;;  %v2648_v21 = vld [vmem:[#allocation7 + $0xa4] ss:$16 sps:$4 sm:$0xff]   ;;  %v2650_v22 = vld [vmem:[#allocation7 + $0xac] ss:$16 sps:$4 sm:$0xff]  }
  0xcb   : > { %851 = vmatprep.subr.bf16.mxu0 %v2630_v9  ;;  %964 = vmatprep.subr.bf16.mxu1 %v2632_v10  ;;  %v2652_v23 = vld [vmem:[#allocation7 + $0xa0] ss:$16 sps:$4 sm:$0xff]   ;;  %v2653_v24 = vld [vmem:[#allocation7 + $0xa8] ss:$16 sps:$4 sm:$0xff]   ;;  %v2654_v25 = vld [vmem:[#allocation7 + $0xc4] ss:$16 sps:$4 sm:$0xff]  }
  0xcc   : > { %v2656_v26 = vld [vmem:[#allocation7 + $0xcc] ss:$16 sps:$4 sm:$0xff]   ;;  %v467_v27 = vld [vmem:[%s3265_s28] sm:$0xff]  ;;  %v2659_v30 = vld [vmem:[#allocation7 + $0xc8] ss:$16 sps:$4 sm:$0xff]   ;;  %s4634_s24 = scalar_lea.vmem [#allocation11], %s2177_s9 }
  0xcd   : > { %v2658_v29 = vld [vmem:[#allocation7 + $0xc0] ss:$16 sps:$4 sm:$0xff]   ;;  %v530_v36 = vld [vmem:[%s3273_s26 + $0x4] sm:$0xf]  ;;  %v531_v38 = vld [vmem:[%s3273_s26 + $0x8] sm:$0xf] }
  0xce   : > { %852 = vmatpush1.bf16.msra.mxu0 %v2634_v11  ;;  %965 = vmatpush1.bf16.msra.mxu1 %v2635_v12  ;;  %v3301_v31 = vld [vmem:[%s4733_s1] ss:$0 sm:$0xff]  ;;  %vm546_vm1 = vcmp.gt.bf16.partialorder %v530_v36, 0  ;;  %v532_v39 = vld [vmem:[%s3273_s26 + $0xc] sm:$0xf]  ;;  %vm547_vm2 = vcmp.gt.bf16.partialorder %v531_v38, 0 }
  0xcf   : > { %853 = vmatprep.subr.bf16.mxu0 %v2636_v13  ;;  %966 = vmatprep.subr.bf16.mxu1 %v2638_v14  ;;  %v529_v32 = vld [vmem:[%s3273_s26] sm:$0xf]  ;;  %v490_v33 = vmul.f32 %v3301_v31, %v467_v27  ;;  %v491_v34 = vmul.f32 %v3301_v31, %v468_v28  ;;  %v2660_v40 = vld [vmem:[#allocation7 + $0xe4] ss:$16 sps:$4 sm:$0xff]   ;;  %v2662_v41 = vld [vmem:[#allocation7 + $0xec] ss:$16 sps:$4 sm:$0xff]  }
  0xd0   : > { %v3309_v35 = vld [vmem:[%s4734_s2] ss:$0 sm:$0xff]  ;;  %vm545_vm0 = vcmp.gt.bf16.partialorder %v529_v32, 0  ;;  %v562_v42 = vsel %vm546_vm1, 65537, %v2955_v0  ;;  %vm548_vm3 = vcmp.gt.bf16.partialorder %v532_v39, 0  ;;  %v469_v49 = vld [vmem:[%s3265_s28 + $0x10] sm:$0xff] }
  0xd1   : > { %v561_v37 = vsel %vm545_vm0, 65537, %v2955_v0  ;;  %v578_v44 = vunpack.c.l.b16 %v562_v42  ;;  %v2664_v45 = vld [vmem:[#allocation7 + $0xe0] ss:$16 sps:$4 sm:$0xff]   ;;  %v513_v46 = vadd.f32 %v3309_v35, %v490_v33  ;;  %v514_v47 = vadd.f32 %v3309_v35, %v491_v34  ;;  %v2665_v48 = vld [vmem:[#allocation7 + $0xe8] ss:$16 sps:$4 sm:$0xff]   ;;  %s2403_s9 = sshll.u32 %s3030_s13, 11 }
  0xd2   : > { %854 = vmatpush1.bf16.msra.mxu0 %v2640_v15  ;;  %967 = vmatpush1.bf16.msra.mxu1 %v2641_v16  ;;  %v577_v43 = vunpack.c.l.b16 %v561_v37  ;;  %v470_v50 = vld [vmem:[%s3265_s28 + $0x18] sm:$0xff]  ;;  %v563_v53 = vsel %vm547_vm2, 65537, %v2955_v0  ;;  %v564_v54 = vsel %vm548_vm3, 65537, %v2955_v0  ;;  %v533_v55 = vld [vmem:[%s3273_s26 + $0x10] sm:$0xf]  ;;  %v492_v57 = vmul.f32 %v3301_v31, %v469_v49  ;;  %v471_v62 = vld [vmem:[%s3265_s28 + $0x20] sm:$0xff] }
  0xd3   : > { %855 = vmatprep.subr.bf16.mxu0 %v2642_v17  ;;  %968 = vmatprep.subr.bf16.mxu1 %v2644_v18  ;;  %vm3324_vm5 = vcmp.ne.s32.totalorder %v578_v44, 0  ;;  %v2218_v56 = vpack.c.bf16 %v514_v47, %v513_v46  ;;  %v493_v58 = vmul.f32 %v3301_v31, %v470_v50  ;;  %v534_v59 = vld [vmem:[%s3273_s26 + $0x14] sm:$0xf]  ;;  %v579_v60 = vunpack.c.l.b16 %v563_v53  ;;  %v472_v63 = vld [vmem:[%s3265_s28 + $0x28] sm:$0xff]  ;;  %v535_v1 = vld [vmem:[%s3273_s26 + $0x18] sm:$0xf] }
  0xd4   : > { %vm3320_vm4 = vcmp.ne.s32.totalorder %v577_v43, 0  ;;  %v580_v61 = vunpack.c.l.b16 %v564_v54  ;;  %vm549_vm7 = vcmp.gt.bf16.partialorder %v533_v55, 0  ;;  %vm550_vm8 = vcmp.gt.bf16.partialorder %v534_v59, 0  ;;  %v2666_v2 = vld [vmem:[#allocation10 + $0x40] sm:$0xff]   ;;  %v536_v5 = vld [vmem:[%s3273_s26 + $0x1c] sm:$0xf] }
  0xd5   : > { %vm2217_vm6 = vmpackc.low %vm3324_vm5, %vm3320_vm4  ;;  %v515_v3 = vadd.f32 %v3309_v35, %v492_v57  ;;  %v516_v4 = vadd.f32 %v3309_v35, %v493_v58  ;;  %vm3346_vm9 = vcmp.ne.s32.totalorder %v579_v60, 0  ;;  %v565_v7 = vsel %vm549_vm7, 65537, %v2955_v0  ;;  %v537_v10 = vld [vmem:[%s3273_s26 + $0x20] sm:$0xf]  ;;  %v538_v16 = vld [vmem:[%s3273_s26 + $0x24] sm:$0xf] }
  0xd6   : > { %856 = vmatpush1.bf16.msra.mxu0 %v2646_v19  ;;  %969 = vmatpush1.bf16.msra.mxu1 %v2647_v20  ;;  %vm3351_vm10 = vcmp.ne.s32.totalorder %v580_v61, 0  ;;  %v566_v9 = vsel %vm550_vm8, 65537, %v2955_v0  ;;  %vm551_vm11 = vcmp.gt.bf16.partialorder %v535_v1, 0  ;;  %v2667_v11 = vld [vmem:[#allocation10] sm:$0xff]   ;;  %vm552_vm12 = vcmp.gt.bf16.partialorder %v536_v5, 0  ;;  %v2670_v18 = vld [vmem:[#allocation10 + $0x48] sm:$0xff]  }
  0xd7   : > { %857 = vmatprep.subr.bf16.mxu0 %v2648_v21  ;;  %970 = vmatprep.subr.bf16.mxu1 %v2650_v22  ;;  %v2668_v12 = vld [vmem:[#allocation10 + $0xc0] sm:$0xff]   ;;  %v2221_v13 = vpack.c.bf16 %v516_v4, %v515_v3  ;;  %v494_v14 = vmul.f32 %v3301_v31, %v471_v62  ;;  %v495_v15 = vmul.f32 %v3301_v31, %v472_v63  ;;  %vm2220_vm13 = vmpackc.low %vm3351_vm10, %vm3346_vm9  ;;  %v581_v19 = vunpack.c.l.b16 %v565_v7  ;;  %v473_v27 = vld [vmem:[%s3265_s28 + $0x30] sm:$0xff]  ;;  %s2024_s16 = sshll.u32 %s4634_s24, 4  ;;  %s4961_s0 = sld [smem:[#allocation25_spill]]  ;;  %s4685_s16 = int_to_ptr.vmem [resolvable:$true] %s2024_s16 }
  0xd8   : > { %v2669_v17 = vld [vmem:[#allocation10 + $0x80] sm:$0xff]   ;;  %v582_v20 = vunpack.c.l.b16 %v566_v9  ;;  %v567_v21 = vsel %vm551_vm11, 65537, %v2955_v0  ;;  %v568_v22 = vsel %vm552_vm12, 65537, %v2955_v0  ;;  %vm553_vm14 = vcmp.gt.bf16.partialorder %v537_v10, 0  ;;  %v474_v28 = vld [vmem:[%s3265_s28 + $0x38] sm:$0xff]  ;;  %v2673_v36 = vld [vmem:[#allocation10 + $0x88] sm:$0xff]  }
  0xd9   : > { %vm554_vm15 = vcmp.gt.bf16.partialorder %v538_v16, 0  ;;  %vm3373_vm0 = vcmp.ne.s32.totalorder %v581_v19, 0  ;;  %v569_v34 = vsel %vm553_vm14, 65537, %v2955_v0  ;;  %v2674_v38 = vld [vmem:[#allocation10 + $0x50] sm:$0xff]   ;;  %v476_v49 = vld [vmem:[%s3265_s28 + $0x48] sm:$0xff]  ;;  %v2678_v51 = vld [vmem:[#allocation10 + $0x58] sm:$0xff]  }
  0xda   : > { %858 = vmatpush1.bf16.msra.mxu0 %v2652_v23  ;;  %971 = vmatpush1.bf16.msra.mxu1 %v2653_v24  ;;  %v2671_v23 = vld [vmem:[#allocation10 + $0x8] sm:$0xff]   ;;  %vm3377_vm1 = vcmp.ne.s32.totalorder %v582_v20, 0  ;;  %v570_v37 = vsel %vm554_vm15, 65537, %v2955_v0  ;;  %v585_v44 = vunpack.c.l.b16 %v569_v34  ;;  %v2676_v47 = vld [vmem:[#allocation10 + $0xd0] sm:$0xff]   ;;  %v2679_v55 = vld [vmem:[#allocation10 + $0x18] sm:$0xff]   ;;  %v499_v63 = vmul.f32 %v3301_v31, %v476_v49  ;;  %s2011_s4 = scalar_lea.sflag [#allocation4], %s3259_s17 }
  0xdb   : > { %859 = vmatprep.subr.bf16.mxu0 %v2654_v25  ;;  %972 = vmatprep.subr.bf16.mxu1 %v2656_v26  ;;  %v2672_v24 = vld [vmem:[#allocation10 + $0xc8] sm:$0xff]   ;;  %v517_v25 = vadd.f32 %v3309_v35, %v494_v14  ;;  %v518_v26 = vadd.f32 %v3309_v35, %v495_v15  ;;  %vm2223_vm2 = vmpackc.low %vm3377_vm1, %vm3373_vm0  ;;  %v586_v46 = vunpack.c.l.b16 %v570_v37  ;;  %v2677_v50 = vld [vmem:[#allocation10 + $0x90] sm:$0xff]   ;;  %s2860_s13 = scalar_lea.vmem %s4685_s16, 2048  ;;  %p4962_p3 = scmp.ne.s32.totalorder %s4764_s21, 0 }
  0xdc   : > { %v539_v57 = vld [vmem:[%s3273_s26 + $0x28] sm:$0xf]  ;;  %v2680_v58 = vld [vmem:[#allocation10 + $0xd8] sm:$0xff]   ;;  %v540_v59 = vld [vmem:[%s3273_s26 + $0x2c] sm:$0xf]  ;;  %v522_v8 = vadd.f32 %v3309_v35, %v499_v63  ;;  %p2861_p12 = scmp.ne.s32.totalorder %s4685_s16, %s2860_s13  ;;  %s2956_s14 = smov [#allocation11]  }
  0xdd   : > { %v2224_v39 = vpack.c.bf16 %v518_v26, %v517_v25  ;;  %vm3412_vm7 = vcmp.ne.s32.totalorder %v586_v46, 0  ;;  %v2681_v60 = vld [vmem:[#allocation10 + $0x98] sm:$0xff]   ;;  %v2682_v1 = vld [vmem:[#allocation10 + $0x60] sm:$0xff]   ;;  %v477_v4 = vld [vmem:[%s3265_s28 + $0x50] sm:$0xff]  ;;  %vm555_vm9 = vcmp.gt.bf16.partialorder %v539_v57, 0  ;;  %vm556_vm10 = vcmp.gt.bf16.partialorder %v540_v59, 0 }
  0xde   : > { %860 = vmatpush1.bf16.msra.mxu0 %v2658_v29  ;;  %973 = vmatpush1.bf16.msra.mxu1 %v2659_v30  ;;  %v583_v29 = vunpack.c.l.b16 %v567_v21  ;;  %v584_v30 = vunpack.c.l.b16 %v568_v22  ;;  %v2684_v3 = vld [vmem:[#allocation10 + $0xe0] sm:$0xff]   ;;  %v478_v5 = vld [vmem:[%s3265_s28 + $0x58] sm:$0xff]  ;;  %v2686_v9 = vld [vmem:[#allocation10 + $0x68] sm:$0xff]   ;;  %v572_v15 = vsel %vm556_vm10, 65537, %v2955_v0  ;;  %p2862_p9 = pnand %p2861_p12, %p4962_p3 }
  0xdf   : > { %861 = vmatprep.subr.bf16.mxu0 %v2660_v40  ;;  %974 = vmatprep.subr.bf16.mxu1 %v2662_v41  ;;  %v496_v40 = vmul.f32 %v3301_v31, %v473_v27  ;;  %v497_v41 = vmul.f32 %v3301_v31, %v474_v28  ;;  %v2685_v6 = vld [vmem:[#allocation10 + $0xa0] sm:$0xff]   ;;  %v541_v10 = vld [vmem:[%s3273_s26 + $0x30] sm:$0xf]  ;;  %v2688_v14 = vld [vmem:[#allocation10 + $0xe8] sm:$0xff]   ;;  %v501_v19 = vmul.f32 %v3301_v31, %v478_v5 }
  0xe0   : > { %vm3390_vm3 = vcmp.ne.s32.totalorder %v583_v29, 0  ;;  %vm3394_vm4 = vcmp.ne.s32.totalorder %v584_v30, 0  ;;  %v2689_v16 = vld [vmem:[#allocation10 + $0xa8] sm:$0xff]   ;;  %v2690_v20 = vld [vmem:[#allocation10 + $0x70] sm:$0xff]   ;;  %vm557_vm11 = vcmp.gt.bf16.partialorder %v541_v10, 0  ;;  %v482_v42 = vld [vmem:[%s3265_s28 + $0x78] sm:$0xff]  ;;  %p2863_p10 = pneg %p2862_p9 }
  0xe1   : > { %v519_v52 = vadd.f32 %v3309_v35, %v496_v40  ;;  %v520_v53 = vadd.f32 %v3309_v35, %v497_v41  ;;  %vm2226_vm5 = vmpackc.low %vm3394_vm4, %vm3390_vm3  ;;  %v2691_v21 = vld [vmem:[#allocation10 + $0x30] sm:$0xff]   ;;  %v480_v25 = vld [vmem:[%s3265_s28 + $0x68] sm:$0xff]  ;;  %v524_v27 = vadd.f32 %v3309_v35, %v501_v19  ;;  %v573_v28 = vsel %vm557_vm11, 65537, %v2955_v0 }
  0xe2   : > { %862 = vmatpush1.bf16.msra.mxu0 %v2664_v45  ;;  %975 = vmatpush1.bf16.msra.mxu1 %v2665_v48  ;;  %v2675_v45 = vld [vmem:[#allocation10 + $0x10] sm:$0xff]   ;;  %v475_v48 = vld [vmem:[%s3265_s28 + $0x40] sm:$0xff]  ;;  %v503_v33 = vmul.f32 %v3301_v31, %v480_v25  ;;  %v543_v34 = vld [vmem:[%s3273_s26 + $0x38] sm:$0xf]  ;;  %v589_v37 = vunpack.c.l.b16 %v573_v28 }
  0xe3   : > { %2404 = vmatprep.subr.bf16.mxu0 %v2666_v2  ;;  %2468 = vmatprep.subr.bf16.mxu1 %v2668_v12  ;;  %v2227_v61 = vpack.c.bf16 %v520_v53, %v519_v52  ;;  %v498_v62 = vmul.f32 %v3301_v31, %v475_v48  ;;  %v2683_v2 = vld [vmem:[#allocation10 + $0x20] sm:$0xff]   ;;  %v2687_v12 = vld [vmem:[#allocation10 + $0x28] sm:$0xff]   ;;  %vm559_vm0 = vcmp.gt.bf16.partialorder %v543_v34, 0  ;;  %v481_v41 = vld [vmem:[%s3265_s28 + $0x70] sm:$0xff] }
  0xe4   : > { %v526_v40 = vadd.f32 %v3309_v35, %v503_v33  ;;  %v575_v43 = vsel %vm559_vm0, 65537, %v2955_v0  ;;  %v504_v46 = vmul.f32 %v3301_v31, %v481_v41  ;;  %v2693_v53 = vld [vmem:[#allocation10 + $0xb0] sm:$0xff]   ;;  %v2694_v54 = vld [vmem:[#allocation10 + $0x78] sm:$0xff]   ;;  %v1073_v5 = vld [vmem:[%s3284_s30] sm:$0xff] }
  0xe5   : > { %2219 = vmatmul.mubr.msk.bf16.vlgmr.msra.gmra.mrb[0].mxu0 %vm2217_vm6, %v2218_v56  ;;  %2243 = vmatmul.mubr.msk.bf16.vlgmr.msra.gmra.mrb[0].mxu1 %vm2217_vm6, %v2218_v56  ;;  %vm3408_vm6 = vcmp.ne.s32.totalorder %v585_v44, 0  ;;  %v521_v7 = vadd.f32 %v3309_v35, %v498_v62  ;;  %v591_v48 = vunpack.c.l.b16 %v575_v43  ;;  %v2695_v56 = vld [vmem:[#allocation10 + $0x38] sm:$0xff]  }
  0xe6   : > { %889 = vmatprep.mubr.bf16.mxu0 %v2955_v0  ;;  %1002 = vmatprep.mubr.bf16.mxu1 %v2955_v0  ;;  %vm2229_vm8 = vmpackc.low %vm3412_vm7, %vm3408_vm6  ;;  %v2697_v57 = vld [vmem:[#allocation10 + $0xb8] sm:$0xff]  }
  0xe7   : > { %2405 = vmatpush3.bf16.msra.mxu0 %v2667_v11  ;;  %2469 = vmatpush3.bf16.msra.mxu1 %v2669_v17  ;;  %v542_v11 = vld [vmem:[%s3273_s26 + $0x34] sm:$0xf]  ;;  %v2230_v17 = vpack.c.bf16 %v522_v8, %v521_v7 }
  0xe8   : > { %2406 = vmatprep.subr.bf16.mxu0 %v2670_v18  ;;  %2470 = vmatprep.subr.bf16.mxu1 %v2672_v24  ;;  %v500_v18 = vmul.f32 %v3301_v31, %v477_v4  ;;  %vm558_vm12 = vcmp.gt.bf16.partialorder %v542_v11, 0  ;;  %v479_v24 = vld [vmem:[%s3265_s28 + $0x60] sm:$0xff] }
  0xe9   : > { %v574_v29 = vsel %vm558_vm12, 65537, %v2955_v0  ;;  %v502_v32 = vmul.f32 %v3301_v31, %v479_v24 }
  0xea   : > { %v523_v26 = vadd.f32 %v3309_v35, %v500_v18 }
  0xeb   : > { %2407 = vmatpush3.bf16.msra.mxu0 %v2671_v23  ;;  %2471 = vmatpush3.bf16.msra.mxu1 %v2673_v36  ;;  %v588_v23 = vunpack.c.l.b16 %v572_v15  ;;  %v544_v36 = vld [vmem:[%s3273_s26 + $0x3c] sm:$0xf]  ;;  %s4683_s26 = scalar_lea.hbm %s4961_s0, %s2403_s9 }
  0xec   : > { %2408 = vmatprep.subr.bf16.mxu0 %v2674_v38  ;;  %2472 = vmatprep.subr.bf16.mxu1 %v2676_v47  ;;  %v2233_v30 = vpack.c.bf16 %v524_v27, %v523_v26  ;;  %v590_v38 = vunpack.c.l.b16 %v574_v29  ;;  %vm560_vm1 = vcmp.gt.bf16.partialorder %v544_v36, 0  ;;  %v505_v47 = vmul.f32 %v3301_v31, %v482_v42  ;;  %v2692_v31 = vld [vmem:[#allocation10 + $0xf0] sm:$0xff]   ;;  %v1076_v27 = vld [vmem:[%s3284_s30 + $0x18] sm:$0xff] }
  0xed   : > { %2222 = vmatmul.mubr.msk.bf16.gmra.mrb[4].mxu0 %vm2220_vm13, %v2221_v13  ;;  %2246 = vmatmul.mubr.msk.bf16.gmra.mrb[4].mxu1 %vm2220_vm13, %v2221_v13  ;;  %v571_v13 = vsel %vm555_vm9, 65537, %v2955_v0  ;;  %vm604_vm14 = vcmp.ne.s32.totalorder %v588_v23, 0  ;;  %v576_v44 = vsel %vm560_vm1, 65537, %v2955_v0 }
  0xee   : > { %899 = vmatprep.mubr.bf16.mxu0 %v2955_v0  ;;  %1012 = vmatprep.mubr.bf16.mxu1 %v2955_v0  ;;  %v587_v22 = vunpack.c.l.b16 %v571_v13  ;;  %vm606_vm3 = vcmp.ne.s32.totalorder %v590_v38, 0  ;;  %v592_v49 = vunpack.c.l.b16 %v576_v44 }
  0xef   : > { %2409 = vmatpush3.bf16.msra.mxu0 %v2675_v45  ;;  %2473 = vmatpush3.bf16.msra.mxu1 %v2677_v50  ;;  %v527_v50 = vadd.f32 %v3309_v35, %v504_v46 }
  0xf0   : > { %2410 = vmatprep.subr.bf16.mxu0 %v2678_v51  ;;  %2474 = vmatprep.subr.bf16.mxu1 %v2680_v58  ;;  %vm603_vm13 = vcmp.ne.s32.totalorder %v587_v22, 0  ;;  %v528_v51 = vadd.f32 %v3309_v35, %v505_v47  ;;  %vm608_vm6 = vcmp.ne.s32.totalorder %v592_v49, 0  ;;  %v1075_v22 = vld [vmem:[%s3284_s30 + $0x10] sm:$0xff] }
  0xf1   : > { %vm2232_vm15 = vmpackc.low %vm604_vm14, %vm603_vm13 }
  0xf2   : > { %v2239_v52 = vpack.c.bf16 %v528_v51, %v527_v50 }
  0xf3   : > { %2411 = vmatpush3.bf16.msra.mxu0 %v2679_v55  ;;  %2475 = vmatpush3.bf16.msra.mxu1 %v2681_v60  ;;  %v2696_v55 = vld [vmem:[#allocation10 + $0xf8] sm:$0xff]  }
  0xf4   : > { %2412 = vmatprep.subr.bf16.mxu0 %v2682_v1  ;;  %2476 = vmatprep.subr.bf16.mxu1 %v2684_v3 }
  0xf5   : > { %2225 = vmatmul.mubr.msk.bf16.gmra.mrb[8].mxu0 %vm2223_vm2, %v2224_v39  ;;  %2249 = vmatmul.mubr.msk.bf16.gmra.mrb[8].mxu1 %vm2223_vm2, %v2224_v39  ;;  %v525_v39 = vadd.f32 %v3309_v35, %v502_v32  ;;  %vm605_vm2 = vcmp.ne.s32.totalorder %v589_v37, 0  ;;  %v667_v35 = vlaneseq }
  0xf6   : > { %909 = vmatprep.mubr.bf16.mxu0 %v2955_v0  ;;  %1022 = vmatprep.mubr.bf16.mxu1 %v2955_v0  ;;  %vm2235_vm4 = vmpackc.low %vm606_vm3, %vm605_vm2  ;;  %vm1107_vm3 = vcmp.gt.bf16.partialorder %v1075_v22, 0 }
  0xf7   : > { %2413 = vmatpush3.bf16.msra.mxu0 %v2683_v2  ;;  %2477 = vmatpush3.bf16.msra.mxu1 %v2685_v6  ;;  %v2236_v45 = vpack.c.bf16 %v526_v40, %v525_v39  ;;  %v668_v58 = vshrl.u32 %v667_v35, 7 }
  0xf8   : > { %2414 = vmatprep.subr.bf16.mxu0 %v2686_v9  ;;  %2478 = vmatprep.subr.bf16.mxu1 %v2688_v14  ;;  %v1074_v14 = vld [vmem:[%s3284_s30 + $0x8] sm:$0xff] }
  0xf9   : > { %v669_v59 = vsub.s32 0, %v668_v58  ;;  %v677_v60 = vsub.s32 2, %v668_v58  ;;  %v673_v62 = vsub.s32 1, %v668_v58  ;;  %v681_v63 = vsub.s32 3, %v668_v58 }
  0xfa   : > { %vm1106_vm14 = vcmp.gt.bf16.partialorder %v1074_v14, 0 }
  0xfb   : > { %2415 = vmatpush3.bf16.msra.mxu0 %v2687_v12  ;;  %2479 = vmatpush3.bf16.msra.mxu1 %v2689_v16 }
  0xfc   : > { %2416 = vmatprep.subr.bf16.mxu0 %v2690_v20  ;;  %2480 = vmatprep.subr.bf16.mxu1 %v2692_v31  ;;  %v1078_v31 = vld [vmem:[%s3284_s30 + $0x28] sm:$0xff] }
  0xfd   : > { %2228 = vmatmul.mubr.msk.bf16.gmra.mrb[12].mxu0 %vm2226_vm5, %v2227_v61  ;;  %2252 = vmatmul.mubr.msk.bf16.gmra.mrb[12].mxu1 %vm2226_vm5, %v2227_v61  ;;  %vm607_vm5 = vcmp.ne.s32.totalorder %v591_v48, 0  ;;  %v665_v61 = vld [vmem:[%s4737_s5] sm:$0xf] }
  0xfe   : > { %919 = vmatprep.mubr.bf16.mxu0 %v2955_v0  ;;  %1032 = vmatprep.mubr.bf16.mxu1 %v2955_v0  ;;  %vm2238_vm7 = vmpackc.low %vm608_vm6, %vm607_vm5  ;;  %v3485_v1 = vrot.slane %v665_v61, %v669_v59  ;;  %v3487_v2 = vrot.slane %v665_v61, %v677_v60  ;;  %v3489_v3 = vrot.slane %v665_v61, %v673_v62  ;;  %v1079_v59 = vld [vmem:[%s3284_s30 + $0x30] sm:$0xff] }
  0xff   : > { %2417 = vmatpush3.bf16.msra.mxu0 %v2691_v21  ;;  %2481 = vmatpush3.bf16.msra.mxu1 %v2693_v53  ;;  %v3491_v4 = vrot.slane %v665_v61, %v681_v63 }
 0x100   : > { %2418 = vmatprep.subr.bf16.mxu0 %v2694_v54  ;;  %2482 = vmatprep.subr.bf16.mxu1 %v2696_v55 }
 0x103   : > { %2419 = vmatpush3.bf16.msra.mxu0 %v2695_v56  ;;  %2483 = vmatpush3.bf16.msra.mxu1 %v2697_v57 }
 0x105   : > { %2231 = vmatmul.mubr.msk.bf16.gmra.mrb[16].mxu0 %vm2229_vm8, %v2230_v17  ;;  %2255 = vmatmul.mubr.msk.bf16.gmra.mrb[16].mxu1 %vm2229_vm8, %v2230_v17  ;;  %vm1105_vm8 = vcmp.gt.bf16.partialorder %v1073_v5, 0 }
 0x106   : > { %929 = vmatprep.mubr.bf16.mxu0 %v2955_v0  ;;  %1042 = vmatprep.mubr.bf16.mxu1 %v2955_v0 }
 0x10d   : > { %2234 = vmatmul.mubr.msk.bf16.gmra.mrb[20].mxu0 %vm2232_vm15, %v2233_v30  ;;  %2258 = vmatmul.mubr.msk.bf16.gmra.mrb[20].mxu1 %vm2232_vm15, %v2233_v30  ;;  %v1077_v30 = vld [vmem:[%s3284_s30 + $0x20] sm:$0xff] }
 0x10e   : > { %939 = vmatprep.mubr.bf16.mxu0 %v2955_v0  ;;  %1052 = vmatprep.mubr.bf16.mxu1 %v2955_v0 }
 0x115   : > { %2237 = vmatmul.mubr.msk.bf16.gmra.mrb[24].mxu0 %vm2235_vm4, %v2236_v45  ;;  %2261 = vmatmul.mubr.msk.bf16.gmra.mrb[24].mxu1 %vm2235_vm4, %v2236_v45 }
 0x116   : > { %949 = vmatprep.mubr.bf16.mxu0 %v2955_v0  ;;  %1062 = vmatprep.mubr.bf16.mxu1 %v2955_v0 }
 0x11d   : > { %2240 = vmatmul.mubr.msk.bf16.gmra.mrb[28].mxu0 %vm2238_vm7, %v2239_v52  ;;  %2264 = vmatmul.mubr.msk.bf16.gmra.mrb[28].mxu1 %vm2238_vm7, %v2239_v52 }
 0x1b8   : > { %v881_v6 = vpop.f32.mrb[0].mxu0  ;;  %v994_v7 = vpop.f32.mrb[0].mxu1 }
 0x1b9   : > { %v3495_v8 = vadd.f32 %v881_v6, %v3485_v1  ;;  %v3498_v9 = vadd.f32 %v994_v7, %v3487_v2  ;;  %v883_v10 = vpop.f32.mrb[1].mxu0  ;;  %v996_v11 = vpop.f32.mrb[1].mxu1  ;;  %v1080_v6 = vld [vmem:[%s3284_s30 + $0x38] sm:$0xff] }
 0x1ba   : > { %v3501_v12 = vadd.f32 %v883_v10, %v3489_v3  ;;  %v3504_v13 = vadd.f32 %v996_v11, %v3491_v4  ;;  %v885_v15 = vpop.f32.mrb[2].mxu0  ;;  %v998_v16 = vpop.f32.mrb[2].mxu1 }
 0x1bb   : > { %vm1137_vm9 = vcmp.gt.f32.partialorder %v3495_v8, 0.0  ;;  %vm1139_vm10 = vcmp.gt.f32.partialorder %v3498_v9, 0.0  ;;  %v3510_v17 = vadd.f32 %v885_v15, %v3485_v1  ;;  %v3513_v18 = vadd.f32 %v998_v16, %v3487_v2  ;;  %v887_v19 = vpop.f32.mrb[3].mxu0  ;;  %v1000_v20 = vpop.f32.mrb[3].mxu1 }
 0x1bc   : > { %vm1138_vm11 = vcmp.gt.f32.partialorder %v3501_v12, 0.0  ;;  %vm1140_vm12 = vcmp.gt.f32.partialorder %v3504_v13, 0.0  ;;  %v3518_v21 = vadd.f32 %v887_v19, %v3489_v3  ;;  %v3522_v23 = vadd.f32 %v1000_v20, %v3491_v4 }
 0x1bd   : > { %vm1201_vm13 = vmpackc.low %vm1138_vm11, %vm1137_vm9  ;;  %v2302_v24 = vpack.c.bf16 %v3510_v17, %v3495_v8  ;;  %v2350_v25 = vpack.c.bf16 %v3513_v18, %v3498_v9  ;;  %vm1141_vm0 = vcmp.gt.f32.partialorder %v3510_v17, 0.0  ;;  %vm1143_vm5 = vcmp.gt.f32.partialorder %v3513_v18, 0.0 }
 0x1be   : > { %vm1233_vm15 = vmand %vm1105_vm8, %vm1201_vm13  ;;  %vm1142_vm1 = vcmp.gt.f32.partialorder %v3518_v21, 0.0  ;;  %v2299_v26 = vpack.c.bf16 %v3518_v21, %v3501_v12  ;;  %v2347_v28 = vpack.c.bf16 %v3522_v23, %v3504_v13  ;;  %vm1144_vm6 = vcmp.gt.f32.partialorder %v3522_v23, 0.0 }
 0x1bf   : > { %v3537_v29 = vsel %vm1233_vm15, 65537, %v2955_v0  ;;  %vm1202_vm2 = vmpackc.low %vm1140_vm12, %vm1139_vm10  ;;  %vm1108_vm8 = vcmp.gt.bf16.partialorder %v1076_v27, 0  ;;  %vm1109_vm10 = vcmp.gt.bf16.partialorder %v1077_v30, 0 }
 0x1c0   : > { %v1297_v32 = vunpack.c.l.b16 %v3537_v29  ;;  %vm1234_vm4 = vmand %vm1106_vm14, %vm1202_vm2  ;;  %v891_v33 = vpop.f32.mrb[4].mxu0  ;;  %v1004_v34 = vpop.f32.mrb[4].mxu1  ;;  %v1298_v62 = vunpack.c.h.b16 %v3537_v29 }
 0x1c1   : > { %v3548_v36 = vsel %vm1234_vm4, 65537, %v2955_v0  ;;  %vm1203_vm7 = vmpackc.low %vm1142_vm1, %vm1141_vm0  ;;  %v3555_v37 = vadd.f32 %v891_v33, %v3485_v1  ;;  %v3558_v38 = vadd.f32 %v1004_v34, %v3487_v2  ;;  %v893_v39 = vpop.f32.mrb[5].mxu0  ;;  %v1006_v40 = vpop.f32.mrb[5].mxu1 }
 0x1c2   : > { %v1299_v41 = vunpack.c.l.b16 %v3548_v36  ;;  %vm1235_vm9 = vmand %vm1107_vm3, %vm1203_vm7  ;;  %v3563_v42 = vadd.f32 %v893_v39, %v3489_v3  ;;  %v3566_v43 = vadd.f32 %v1006_v40, %v3491_v4  ;;  %v895_v44 = vpop.f32.mrb[6].mxu0  ;;  %v1008_v45 = vpop.f32.mrb[6].mxu1  ;;  %vm3568_vm11 = vcmp.ne.s32.totalorder %v1297_v32, 0 }
 0x1c3   : > { %v1267_v47 = vsel %vm1235_vm9, 65537, %v2955_v0  ;;  %vm1204_vm12 = vmpackc.low %vm1144_vm6, %vm1143_vm5  ;;  %vm1145_vm13 = vcmp.gt.f32.partialorder %v3555_v37, 0.0  ;;  %v3579_v48 = vadd.f32 %v895_v44, %v3485_v1  ;;  %v897_v49 = vpop.f32.mrb[7].mxu0  ;;  %v1010_v50 = vpop.f32.mrb[7].mxu1  ;;  %vm1147_vm0 = vcmp.gt.f32.partialorder %v3558_v38, 0.0 }
 0x1c4   : > { %vm3581_vm14 = vcmp.ne.s32.totalorder %v1299_v41, 0  ;;  %v1301_v52 = vunpack.c.l.b16 %v1267_v47  ;;  %vm1236_vm15 = vmand %vm1108_vm8, %vm1204_vm12  ;;  %vm1146_vm1 = vcmp.gt.f32.partialorder %v3563_v42, 0.0  ;;  %vm1148_vm3 = vcmp.gt.f32.partialorder %v3566_v43, 0.0 }
 0x1c5   : > { %v1268_v53 = vsel %vm1236_vm15, 65537, %v2955_v0  ;;  %vm1205_vm2 = vmpackc.low %vm1146_vm1, %vm1145_vm13  ;;  %v2308_v54 = vpack.c.bf16 %v3579_v48, %v3555_v37  ;;  %v3594_v55 = vadd.f32 %v1008_v45, %v3487_v2  ;;  %v3606_v58 = vadd.f32 %v897_v49, %v3489_v3 }
 0x1c6   : > { %vm3596_vm4 = vcmp.ne.s32.totalorder %v1301_v52, 0  ;;  %v1303_v57 = vunpack.c.l.b16 %v1268_v53  ;;  %vm3601_vm5 = vmand %vm1109_vm10, %vm1205_vm2  ;;  %v3610_v60 = vadd.f32 %v1010_v50, %v3491_v4  ;;  %vm1110_vm7 = vcmp.gt.bf16.partialorder %v1078_v31, 0  ;;  %v1082_v31 = vld [vmem:[%s3284_s30 + $0x48] sm:$0xff] }
 0x1c7   : > { %vm1149_vm8 = vcmp.gt.f32.partialorder %v3579_v48, 0.0  ;;  %v2356_v61 = vpack.c.bf16 %v3594_v55, %v3558_v38  ;;  %vm1206_vm10 = vmpackc.low %vm1148_vm3, %vm1147_vm0  ;;  %vm1150_vm12 = vcmp.gt.f32.partialorder %v3606_v58, 0.0  ;;  %v2305_v5 = vpack.c.bf16 %v3606_v58, %v3563_v42 }
 0x1c8   : > { %vm3620_vm9 = vcmp.ne.s32.totalorder %v1303_v57, 0  ;;  %v1302_v7 = vunpack.c.h.b16 %v1267_v47  ;;  %v901_v10 = vpop.f32.mrb[8].mxu0  ;;  %v1014_v11 = vpop.f32.mrb[8].mxu1  ;;  %vm1151_vm15 = vcmp.gt.f32.partialorder %v3594_v55, 0.0  ;;  %vm1111_vm1 = vcmp.gt.bf16.partialorder %v1079_v59, 0  ;;  %vm1238_vm0 = vmand %vm1110_vm7, %vm1206_vm10  ;;  %v1081_v47 = vld [vmem:[%s3284_s30 + $0x40] sm:$0xff] }
 0x1c9   : > { %v2353_v14 = vpack.c.bf16 %v3610_v60, %v3566_v43  ;;  %v1300_v15 = vunpack.c.h.b16 %v3548_v36  ;;  %v903_v16 = vpop.f32.mrb[9].mxu0  ;;  %v1016_v19 = vpop.f32.mrb[9].mxu1  ;;  %vm1152_vm2 = vcmp.gt.f32.partialorder %v3610_v60, 0.0  ;;  %v1304_v20 = vunpack.c.h.b16 %v1268_v53  ;;  %vm1207_vm3 = vmpackc.low %vm1150_vm12, %vm1149_vm8 }
 0x1ca   : > { %v3643_v22 = vadd.f32 %v901_v10, %v3485_v1  ;;  %v3646_v27 = vadd.f32 %v903_v16, %v3489_v3  ;;  %v905_v29 = vpop.f32.mrb[10].mxu0  ;;  %v1018_v30 = vpop.f32.mrb[10].mxu1  ;;  %vm1112_vm13 = vcmp.gt.bf16.partialorder %v1080_v6, 0  ;;  %v3653_v32 = vadd.f32 %v1014_v11, %v3487_v2  ;;  %vm1239_vm7 = vmand %vm1111_vm1, %vm1207_vm3  ;;  %v1083_v6 = vld [vmem:[%s3284_s30 + $0x50] sm:$0xff] }
 0x1cb   : > { %v3656_v33 = vadd.f32 %v1016_v19, %v3491_v4  ;;  %v3659_v34 = vadd.f32 %v905_v29, %v3485_v1  ;;  %v907_v36 = vpop.f32.mrb[11].mxu0  ;;  %v1020_v39 = vpop.f32.mrb[11].mxu1  ;;  %v3662_v40 = vsel %vm1238_vm0, 65537, %v2955_v0  ;;  %vm3665_vm10 = vcmp.ne.s32.totalorder %v1298_v62, 0  ;;  %vm1208_vm1 = vmpackc.low %vm1152_vm2, %vm1151_vm15 }
 0x1cc   : > { %vm3669_vm8 = vcmp.ne.s32.totalorder %v1302_v7, 0  ;;  %vm3673_vm12 = vcmp.ne.s32.totalorder %v1300_v15, 0  ;;  %v3679_v49 = vsel %vm1239_vm7, 65537, %v2955_v0  ;;  %vm3685_vm0 = vcmp.ne.s32.totalorder %v1304_v20, 0  ;;  %vm1240_vm6 = vmand %vm1112_vm13, %vm1208_vm1  ;;  %v1084_v7 = vld [vmem:[%s3284_s30 + $0x58] sm:$0xff]  ;;  %v3731_v20 = vld [vmem:[%s3284_s30 + $0x60] sm:$0xff] }
 0x1cd   : > { %vm1153_vm3 = vcmp.gt.f32.partialorder %v3643_v22, 0.0  ;;  %v2314_v52 = vpack.c.bf16 %v3659_v34, %v3643_v22  ;;  %vm1154_vm7 = vcmp.gt.f32.partialorder %v3646_v27, 0.0  ;;  %v3696_v53 = vadd.f32 %v1018_v30, %v3487_v2  ;;  %vm2298_vm13 = vmpackc.low %vm3669_vm8, %vm3665_vm10 }
 0x1ce   : > { %v3699_v57 = vadd.f32 %v907_v36, %v3489_v3  ;;  %v3702_v59 = vadd.f32 %v1020_v39, %v3491_v4  ;;  %v1269_v62 = vsel %vm3601_vm5, 65537, %v2955_v0  ;;  %vm1155_vm15 = vcmp.gt.f32.partialorder %v3653_v32, 0.0  ;;  %2300 = vmatprep.mubr.msk.bf16.mxu0 %vm2298_vm13, %v2299_v26  ;;  %vm2346_vm5 = vmpackc.low %vm3685_vm0, %vm3673_vm12 }
 0x1cf   : > { %vm1113_vm2 = vcmp.gt.bf16.partialorder %v1081_v47, 0  ;;  %vm1156_vm1 = vcmp.gt.f32.partialorder %v3656_v33, 0.0  ;;  %v3716_v10 = vsel %vm1240_vm6, 65537, %v2955_v0  ;;  %v2362_v35 = vpack.c.bf16 %v3696_v53, %v3653_v32  ;;  %2348 = vmatprep.mubr.msk.bf16.mxu1 %vm2346_vm5, %v2347_v28  ;;  %vm4825_vm6 = vmpackc.low %vm3596_vm4, %vm3568_vm11 }
 0x1d0   : > { %v2311_v11 = vpack.c.bf16 %v3699_v57, %v3646_v27  ;;  %v1310_v15 = vunpack.c.h.b16 %v3679_v49  ;;  %v911_v16 = vpop.f32.mrb[12].mxu0  ;;  %v1024_v19 = vpop.f32.mrb[12].mxu1  ;;  %2303 = vmatmul.mubr.msk.bf16.vlgmr.msra.gmra.mrb[32].mxu0 %vm4825_vm6, %v2302_v24  ;;  %vm1209_vm10 = vmpackc.low %vm1154_vm7, %vm1153_vm3  ;;  %vm1114_vm8 = vcmp.gt.bf16.partialorder %v1082_v31, 0  ;;  %v2359_v12 = vpack.c.bf16 %v3702_v59, %v3656_v33 }
 0x1d1   : > { %v1308_v13 = vunpack.c.h.b16 %v3662_v40  ;;  %v913_v21 = vpop.f32.mrb[13].mxu0  ;;  %v1026_v23 = vpop.f32.mrb[13].mxu1  ;;  %vm4826_vm11 = vmpackc.low %vm3620_vm9, %vm3581_vm14  ;;  %vm1157_vm12 = vcmp.gt.f32.partialorder %v3659_v34, 0.0  ;;  %vm1115_vm0 = vcmp.gt.bf16.partialorder %v1083_v6, 0  ;;  %vm1158_vm3 = vcmp.gt.f32.partialorder %v3699_v57, 0.0 }
 0x1d2   : > { %2351 = vmatmul.mubr.msk.bf16.vlgmr.msra.gmra.mrb[32].mxu1 %vm4826_vm11, %v2350_v25  ;;  %vm3760_vm4 = vmand %vm1113_vm2, %vm1209_vm10  ;;  %vm1116_vm7 = vcmp.gt.bf16.partialorder %v1084_v7, 0  ;;  %v915_v17 = vpop.f32.mrb[14].mxu0  ;;  %v1028_v24 = vpop.f32.mrb[14].mxu1  ;;  %v1306_v9 = vunpack.c.h.b16 %v1269_v62  ;;  %v1312_v18 = vunpack.c.h.b16 %v3716_v10  ;;  %v1305_v25 = vunpack.c.l.b16 %v1269_v62  ;;  %v3848_v7 = vld [vmem:[%s3284_s30 + $0x70] sm:$0xff] }
 0x1d3   : > { %vm1210_vm13 = vmpackc.low %vm1156_vm1, %vm1155_vm15  ;;  %vm1117_vm14 = vcmp.gt.bf16.partialorder %v3731_v20, 0  ;;  %v917_v26 = vpop.f32.mrb[15].mxu0  ;;  %v1030_v28 = vpop.f32.mrb[15].mxu1  ;;  %vm1159_vm2 = vcmp.gt.f32.partialorder %v3696_v53, 0.0  ;;  %vm1160_vm5 = vcmp.gt.f32.partialorder %v3702_v59, 0.0  ;;  %vm3779_vm6 = vcmp.ne.s32.totalorder %v1310_v15, 0 }
 0x1d4   : > { %vm3773_vm9 = vmand %vm1114_vm8, %vm1210_vm13  ;;  %v1309_v56 = vunpack.c.l.b16 %v3679_v49  ;;  %vm3788_vm1 = vcmp.ne.s32.totalorder %v1308_v13, 0  ;;  %v1307_v29 = vunpack.c.l.b16 %v3662_v40  ;;  %v1311_v30 = vunpack.c.l.b16 %v3716_v10  ;;  %v1086_v49 = vld [vmem:[%s3284_s30 + $0x68] sm:$0xff] }
 0x1d5   : > { %vm1211_vm15 = vmpackc.low %vm1158_vm3, %vm1157_vm12  ;;  %v3795_v36 = vadd.f32 %v1024_v19, %v3487_v2  ;;  %v3803_v41 = vadd.f32 %v911_v16, %v3485_v1  ;;  %v3806_v44 = vadd.f32 %v913_v21, %v3489_v3  ;;  %v3809_v45 = vadd.f32 %v1026_v23, %v3491_v4 }
 0x1d6   : > { %vm3798_vm10 = vmand %vm1115_vm0, %vm1211_vm15  ;;  %v3812_v40 = vadd.f32 %v915_v17, %v3485_v1  ;;  %vm3814_vm11 = vcmp.ne.s32.totalorder %v1312_v18, 0  ;;  %v3820_v50 = vadd.f32 %v1028_v24, %v3487_v2  ;;  %v3823_v31 = vadd.f32 %v917_v26, %v3489_v3  ;;  %v3870_v18 = vld [vmem:[%s3284_s30 + $0x78] sm:$0xff] }
 0x1d7   : > { %vm1212_vm8 = vmpackc.low %vm1160_vm5, %vm1159_vm2  ;;  %v3826_v62 = vadd.f32 %v1030_v28, %v3491_v4  ;;  %vm3833_vm0 = vcmp.ne.s32.totalorder %v1306_v9, 0  ;;  %vm3837_vm3 = vcmp.ne.s32.totalorder %v1305_v25, 0  ;;  %vm3841_vm13 = vcmp.ne.s32.totalorder %v1309_v56, 0 }
 0x1d8   : > { %vm3829_vm12 = vmand %vm1116_vm7, %vm1212_vm8  ;;  %v2320_v19 = vpack.c.bf16 %v3812_v40, %v3803_v41  ;;  %v921_v13 = vpop.f32.mrb[16].mxu0  ;;  %v1034_v21 = vpop.f32.mrb[16].mxu1  ;;  %v3853_v23 = vsel %vm3760_vm4, 65537, %v2955_v0  ;;  %vm3859_vm2 = vcmp.ne.s32.totalorder %v1307_v29, 0  ;;  %vm3863_vm5 = vcmp.ne.s32.totalorder %v1311_v30, 0  ;;  %v3946_v29 = vld [vmem:[%s3284_s30 + $0x80] sm:$0xff] }
 0x1d9   : > { %vm2304_vm7 = vmpackc.low %vm3779_vm6, %vm3833_vm0  ;;  %v2368_v9 = vpack.c.bf16 %v3820_v50, %v3795_v36  ;;  %v923_v8 = vpop.f32.mrb[17].mxu0  ;;  %v1036_v25 = vpop.f32.mrb[17].mxu1  ;;  %vm1161_vm6 = vcmp.gt.f32.partialorder %v3803_v41, 0.0  ;;  %vm1162_vm15 = vcmp.gt.f32.partialorder %v3806_v44, 0.0  ;;  %v2317_v26 = vpack.c.bf16 %v3823_v31, %v3806_v44 }
 0x1da   : > { %2306 = vmatprep.mubr.msk.bf16.mxu0 %vm2304_vm7, %v2305_v5  ;;  %vm2352_vm4 = vmpackc.low %vm3814_vm11, %vm3788_vm1  ;;  %v2365_v28 = vpack.c.bf16 %v3826_v62, %v3809_v45  ;;  %v925_v51 = vpop.f32.mrb[18].mxu0  ;;  %v1038_v56 = vpop.f32.mrb[18].mxu1  ;;  %v3888_v42 = vsel %vm3773_vm9, 65537, %v2955_v0  ;;  %v1275_v58 = vsel %vm3798_vm10, 65537, %v2955_v0  ;;  %vm1118_vm8 = vcmp.gt.bf16.partialorder %v1086_v49, 0 }
 0x1db   : > { %2354 = vmatprep.mubr.msk.bf16.mxu1 %vm2352_vm4, %v2353_v14  ;;  %vm2307_vm1 = vmpackc.low %vm3841_vm13, %vm3837_vm3  ;;  %vm1119_vm11 = vcmp.gt.bf16.partialorder %v3848_v7, 0  ;;  %v927_v5 = vpop.f32.mrb[19].mxu0  ;;  %v1040_v46 = vpop.f32.mrb[19].mxu1  ;;  %v1276_v63 = vsel %vm3829_vm12, 65537, %v2955_v0  ;;  %vm1163_vm10 = vcmp.gt.f32.partialorder %v3795_v36, 0.0  ;;  %vm1164_vm0 = vcmp.gt.f32.partialorder %v3809_v45, 0.0 }
 0x1dc   : > { %2309 = vmatmul.mubr.msk.bf16.gmra.mrb[36].mxu0 %vm2307_vm1, %v2308_v54  ;;  %vm2355_vm9 = vmpackc.low %vm3863_vm5, %vm3859_vm2  ;;  %vm1120_vm3 = vcmp.gt.bf16.partialorder %v3870_v18, 0  ;;  %vm1165_vm13 = vcmp.gt.f32.partialorder %v3812_v40, 0.0  ;;  %vm1167_vm7 = vcmp.gt.f32.partialorder %v3820_v50, 0.0  ;;  %vm1166_vm2 = vcmp.gt.f32.partialorder %v3823_v31, 0.0  ;;  %v1096_v36 = vld [vmem:[%s3284_s30 + $0xb8] sm:$0xff] }
 0x1dd   : > { %2357 = vmatmul.mubr.msk.bf16.gmra.mrb[36].mxu1 %vm2355_vm9, %v2356_v61  ;;  %vm1213_vm12 = vmpackc.low %vm1162_vm15, %vm1161_vm6  ;;  %v1314_v37 = vunpack.c.h.b16 %v3853_v23  ;;  %vm1168_vm4 = vcmp.gt.f32.partialorder %v3826_v62, 0.0  ;;  %v1318_v38 = vunpack.c.h.b16 %v1275_v58  ;;  %v1316_v48 = vunpack.c.h.b16 %v3888_v42 }
 0x1de   : > { %vm3927_vm5 = vmand %vm1117_vm14, %vm1213_vm12  ;;  %v3934_v54 = vadd.f32 %v1034_v21, %v3487_v2  ;;  %v1320_v55 = vunpack.c.h.b16 %v1276_v63  ;;  %v1313_v60 = vunpack.c.l.b16 %v3853_v23  ;;  %v1317_v61 = vunpack.c.l.b16 %v1275_v58  ;;  %v3969_v21 = vld [vmem:[%s3284_s30 + $0x88] sm:$0xff] }
 0x1df   : > { %vm1214_vm6 = vmpackc.low %vm1164_vm0, %vm1163_vm10  ;;  %v3938_v14 = vadd.f32 %v921_v13, %v3485_v1  ;;  %v3949_v30 = vadd.f32 %v1036_v25, %v3491_v4  ;;  %v3952_v39 = vadd.f32 %v925_v51, %v3485_v1  ;;  %v3955_v47 = vadd.f32 %v1038_v56, %v3487_v2  ;;  %v4128_v51 = vld [vmem:[%s3284_s30 + $0xa0] sm:$0xff] }
 0x1e0   : > { %vm3941_vm14 = vmand %vm1118_vm8, %vm1214_vm6  ;;  %v3958_v6 = vadd.f32 %v927_v5, %v3489_v3  ;;  %v931_v49 = vpop.f32.mrb[20].mxu0  ;;  %v1044_v10 = vpop.f32.mrb[20].mxu1  ;;  %v1315_v15 = vunpack.c.l.b16 %v3888_v42  ;;  %v1319_v16 = vunpack.c.l.b16 %v1276_v63  ;;  %v3966_v13 = vadd.f32 %v923_v8, %v3489_v3  ;;  %v3991_v42 = vld [vmem:[%s3284_s30 + $0x90] sm:$0xff] }
 0x1e1   : > { %vm1215_vm15 = vmpackc.low %vm1166_vm2, %vm1165_vm13  ;;  %v3972_v23 = vadd.f32 %v1040_v46, %v3491_v4  ;;  %v933_v17 = vpop.f32.mrb[21].mxu0  ;;  %v3974_v24 = vpop.f32.mrb[21].mxu1  ;;  %vm3982_vm8 = vcmp.ne.s32.totalorder %v1318_v38, 0  ;;  %vm3997_vm9 = vcmp.ne.s32.totalorder %v1316_v48, 0  ;;  %vm4001_vm10 = vcmp.ne.s32.totalorder %v1320_v55, 0 }
 0x1e2   : > { %vm3978_vm1 = vmand %vm1119_vm11, %vm1215_vm15  ;;  %v935_v58 = vpop.f32.mrb[22].mxu0  ;;  %v1048_v5 = vpop.f32.mrb[22].mxu1  ;;  %vm1121_vm0 = vcmp.gt.bf16.partialorder %v3946_v29, 0  ;;  %vm1378_vm13 = vcmp.ne.s32.totalorder %v1314_v37, 0  ;;  %vm4025_vm6 = vcmp.ne.s32.totalorder %v1313_v60, 0  ;;  %vm4033_vm15 = vcmp.ne.s32.totalorder %v1319_v16, 0 }
 0x1e3   : > { %vm1216_vm11 = vmpackc.low %vm1168_vm4, %vm1167_vm7  ;;  %v937_v38 = vpop.f32.mrb[23].mxu0  ;;  %v4008_v56 = vpop.f32.mrb[23].mxu1  ;;  %vm4016_vm7 = vcmp.ne.s32.totalorder %v1317_v61, 0  ;;  %v2371_v55 = vpack.c.bf16 %v3972_v23, %v3949_v30  ;;  %v4041_v61 = vsel %vm3927_vm5, 65537, %v2955_v0  ;;  %vm1171_vm2 = vcmp.gt.f32.partialorder %v3934_v54, 0.0  ;;  %v4156_v37 = vld [vmem:[%s3284_s30 + $0xb0] sm:$0xff] }
 0x1e4   : > { %vm4012_vm12 = vmand %vm1120_vm3, %vm1216_vm11  ;;  %vm4029_vm3 = vcmp.ne.s32.totalorder %v1315_v15, 0  ;;  %vm1170_vm11 = vcmp.gt.f32.partialorder %v3966_v13, 0.0  ;;  %v4056_v43 = vsel %vm3941_vm14, 65537, %v2955_v0  ;;  %v1279_v27 = vsel %vm3978_vm1, 65537, %v2955_v0 }
 0x1e5   : > { %vm2310_vm4 = vmpackc.low %vm3982_vm8, %vm1378_vm13  ;;  %vm1169_vm13 = vcmp.gt.f32.partialorder %v3938_v14, 0.0  ;;  %v1280_v57 = vsel %vm4012_vm12, 65537, %v2955_v0  ;;  %vm1175_vm1 = vcmp.gt.f32.partialorder %v3955_v47, 0.0  ;;  %v4083_v33 = vadd.f32 %v1044_v10, %v3487_v2 }
 0x1e6   : > { %2312 = vmatprep.mubr.msk.bf16.mxu0 %vm2310_vm4, %v2311_v11  ;;  %vm2358_vm8 = vmpackc.low %vm4001_vm10, %vm3997_vm9  ;;  %vm1172_vm9 = vcmp.gt.f32.partialorder %v3949_v30, 0.0  ;;  %vm1173_vm10 = vcmp.gt.f32.partialorder %v3952_v39, 0.0  ;;  %vm1176_vm4 = vcmp.gt.f32.partialorder %v3972_v23, 0.0  ;;  %v4096_v22 = vadd.f32 %v931_v49, %v3485_v1 }
 0x1e7   : > { %2360 = vmatprep.mubr.msk.bf16.mxu1 %vm2358_vm8, %v2359_v12  ;;  %vm2313_vm5 = vmpackc.low %vm4016_vm7, %vm4025_vm6  ;;  %vm1174_vm7 = vcmp.gt.f32.partialorder %v3958_v6, 0.0  ;;  %v4099_v34 = vadd.f32 %v935_v58, %v3485_v1  ;;  %v1322_v60 = vunpack.c.h.b16 %v4041_v61  ;;  %v1326_v20 = vunpack.c.h.b16 %v1279_v27 }
 0x1e8   : > { %2315 = vmatmul.mubr.msk.bf16.gmra.mrb[40].mxu0 %vm2313_vm5, %v2314_v52  ;;  %vm2361_vm14 = vmpackc.low %vm4033_vm15, %vm4029_vm3  ;;  %v941_v59 = vpop.f32.mrb[24].mxu0  ;;  %v4085_v11 = vpop.f32.mrb[24].mxu1  ;;  %v4102_v52 = vadd.f32 %v1048_v5, %v3487_v2  ;;  %v4117_v49 = vadd.f32 %v933_v17, %v3489_v3  ;;  %v4120_v10 = vadd.f32 %v937_v38, %v3489_v3  ;;  %v1324_v29 = vunpack.c.h.b16 %v4056_v43  ;;  %v4144_v38 = vld [vmem:[%s3284_s30 + $0xa8] sm:$0xff] }
 0x1e9   : > { %2363 = vmatmul.mubr.msk.bf16.gmra.mrb[40].mxu1 %vm2361_vm14, %v2362_v35  ;;  %vm1217_vm12 = vmpackc.low %vm1170_vm11, %vm1169_vm13  ;;  %v4104_v12 = vpop.f32.mrb[25].mxu0  ;;  %v4106_v32 = vpop.f32.mrb[25].mxu1  ;;  %v1092_v35 = vld [vmem:[%s3284_s30 + $0x98] sm:$0xff]  ;;  %v1328_v25 = vunpack.c.h.b16 %v1280_v57  ;;  %v4132_v17 = vadd.f32 %v3974_v24, %v3491_v4  ;;  %vm4875_vm3 = vcmp.gt.bf16.partialorder %v3969_v21, 0  ;;  %v1321_v46 = vunpack.c.l.b16 %v4041_v61 }
 0x1ea   : > { %vm4110_vm6 = vmand %vm1121_vm0, %vm1217_vm12  ;;  %v945_v15 = vpop.f32.mrb[26].mxu0  ;;  %v1058_v16 = vpop.f32.mrb[26].mxu1  ;;  %v1325_v63 = vunpack.c.l.b16 %v1279_v27  ;;  %v2329_v48 = vpack.c.bf16 %v4120_v10, %v4117_v49  ;;  %vm1124_vm11 = vcmp.gt.bf16.partialorder %v1092_v35, 0  ;;  %v1323_v21 = vunpack.c.l.b16 %v4056_v43  ;;  %v1097_v35 = vld [vmem:[%s3284_s30 + $0xc0] sm:$0xff] }
 0x1eb   : > { %vm1218_vm0 = vmpackc.low %vm1172_vm9, %vm1171_vm2  ;;  %v947_v58 = vpop.f32.mrb[27].mxu0  ;;  %v1060_v5 = vpop.f32.mrb[27].mxu1  ;;  %v1327_v18 = vunpack.c.l.b16 %v1280_v57  ;;  %v4160_v61 = vadd.f32 %v4008_v56, %v3491_v4  ;;  %vm4878_vm8 = vcmp.gt.bf16.partialorder %v3991_v42, 0  ;;  %vm4168_vm5 = vcmp.ne.s32.totalorder %v1326_v20, 0 }
 0x1ec   : > { %vm4138_vm15 = vmand %vm4875_vm3, %vm1218_vm0  ;;  %v4174_v43 = vadd.f32 %v941_v59, %v3485_v1  ;;  %vm4180_vm14 = vcmp.ne.s32.totalorder %v1324_v29, 0  ;;  %vm1386_vm3 = vcmp.ne.s32.totalorder %v1322_v60, 0  ;;  %vm1177_vm12 = vcmp.gt.f32.partialorder %v4096_v22, 0.0 }
 0x1ed   : > { %vm1219_vm2 = vmpackc.low %vm1174_vm7, %vm1173_vm10  ;;  %vm4184_vm7 = vcmp.ne.s32.totalorder %v1328_v25, 0  ;;  %v2377_v57 = vpack.c.bf16 %v4160_v61, %v4132_v17  ;;  %vm1179_vm9 = vcmp.gt.f32.partialorder %v4083_v33, 0.0  ;;  %v1282_v24 = vsel %vm4138_vm15, 65537, %v2955_v0 }
 0x1ee   : > { %vm4164_vm13 = vmand %vm4878_vm8, %vm1219_vm2  ;;  %vm4195_vm2 = vcmp.ne.s32.totalorder %v1321_v46, 0  ;;  %vm4208_vm8 = vcmp.ne.s32.totalorder %v1323_v21, 0  ;;  %v4236_v21 = vadd.f32 %v4085_v11, %v3487_v2  ;;  %v4250_v31 = vadd.f32 %v4106_v32, %v3491_v4 }
 0x1ef   : > { %vm1220_vm10 = vmpackc.low %vm1176_vm4, %vm1175_vm1  ;;  %vm4199_vm1 = vcmp.ne.s32.totalorder %v1325_v63, 0  ;;  %vm1180_vm4 = vcmp.gt.f32.partialorder %v4132_v17, 0.0  ;;  %v1283_v44 = vsel %vm4164_vm13, 65537, %v2955_v0  ;;  %v4256_v11 = vadd.f32 %v1058_v16, %v3487_v2  ;;  %v1103_v17 = vld [vmem:[%s3284_s30 + $0xf0] sm:$0xff] }
 0x1f0   : > { %vm4191_vm0 = vmand %vm1124_vm11, %vm1220_vm10  ;;  %v951_v29 = vpop.f32.mrb[28].mxu0  ;;  %v4204_v25 = vpop.f32.mrb[28].mxu1  ;;  %vm4212_vm10 = vcmp.ne.s32.totalorder %v1327_v18, 0  ;;  %v4277_v32 = vadd.f32 %v947_v58, %v3489_v3  ;;  %v1281_v41 = vsel %vm4110_vm6, 65537, %v2955_v0  ;;  %vm1182_vm6 = vcmp.gt.f32.partialorder %v4120_v10, 0.0 }
 0x1f1   : > { %vm2316_vm11 = vmpackc.low %vm4168_vm5, %vm1386_vm3  ;;  %v4218_v46 = vpop.f32.mrb[29].mxu0  ;;  %v4220_v63 = vpop.f32.mrb[29].mxu1  ;;  %vm1178_vm3 = vcmp.gt.f32.partialorder %v4117_v49, 0.0  ;;  %v1284_v62 = vsel %vm4191_vm0, 65537, %v2955_v0  ;;  %vm1183_vm0 = vcmp.gt.f32.partialorder %v4102_v52, 0.0  ;;  %v1334_v50 = vunpack.c.h.b16 %v1283_v44 }
 0x1f2   : > { %2318 = vmatprep.mubr.msk.bf16.mxu0 %vm2316_vm11, %v2317_v26  ;;  %vm2364_vm5 = vmpackc.low %vm4184_vm7, %vm4180_vm14  ;;  %v955_v18 = vpop.f32.mrb[30].mxu0  ;;  %v1068_v7 = vpop.f32.mrb[30].mxu1  ;;  %v4253_v26 = vadd.f32 %v945_v15, %v3485_v1  ;;  %v4280_v15 = vadd.f32 %v1060_v5, %v3491_v4  ;;  %vm1181_vm7 = vcmp.gt.f32.partialorder %v4099_v34, 0.0  ;;  %v1332_v53 = vunpack.c.h.b16 %v1282_v24 }
 0x1f3   : > { %2366 = vmatprep.mubr.msk.bf16.mxu1 %vm2364_vm5, %v2365_v28  ;;  %vm2319_vm15 = vmpackc.low %vm4199_vm1, %vm4195_vm2  ;;  %v4258_v27 = vpop.f32.mrb[31].mxu0  ;;  %v4260_v45 = vpop.f32.mrb[31].mxu1  ;;  %v4274_v28 = vadd.f32 %v4104_v12, %v3489_v3  ;;  %vm4897_vm2 = vcmp.gt.bf16.partialorder %v4128_v51, 0  ;;  %v1336_v16 = vunpack.c.h.b16 %v1284_v62  ;;  %v4315_v8 = vadd.f32 %v951_v29, %v3485_v1 }
 0x1f4   : > { %2321 = vmatmul.mubr.msk.bf16.gmra.mrb[44].mxu0 %vm2319_vm15, %v2320_v19  ;;  %vm2367_vm13 = vmpackc.low %vm4212_vm10, %vm4208_vm8  ;;  %v2338_v40 = vpack.c.bf16 %v4253_v26, %v4174_v43  ;;  %v2383_v51 = vpack.c.bf16 %v4280_v15, %v4250_v31  ;;  %vm4900_vm11 = vcmp.gt.bf16.partialorder %v4144_v38, 0  ;;  %vm1184_vm10 = vcmp.gt.f32.partialorder %v4160_v61, 0.0 }
 0x1f5   : > { %2369 = vmatmul.mubr.msk.bf16.gmra.mrb[44].mxu1 %vm2367_vm13, %v2368_v9  ;;  %vm1221_vm14 = vmpackc.low %vm1178_vm3, %vm1177_vm12  ;;  %v2386_v9 = vpack.c.bf16 %v4256_v11, %v4236_v21  ;;  %v2335_v12 = vpack.c.bf16 %v4277_v32, %v4274_v28  ;;  %v1330_v5 = vunpack.c.h.b16 %v1281_v41  ;;  %v1333_v56 = vunpack.c.l.b16 %v1283_v44 }
 0x1f6   : > { %vm4298_vm1 = vmand %vm4897_vm2, %vm1221_vm14  ;;  %v1331_v42 = vunpack.c.l.b16 %v1282_v24  ;;  %v1335_v59 = vunpack.c.l.b16 %v1284_v62  ;;  %v4330_v20 = vadd.f32 %v955_v18, %v3485_v1  ;;  %vm4903_vm5 = vcmp.gt.bf16.partialorder %v4156_v37, 0  ;;  %v1101_v18 = vld [vmem:[%s3284_s30 + $0xe0] sm:$0xff] }
 0x1f7   : > { %vm1222_vm12 = vmpackc.low %vm1180_vm4, %vm1179_vm9  ;;  %vm1128_vm4 = vcmp.gt.bf16.partialorder %v1096_v36, 0  ;;  %vm4338_vm15 = vcmp.ne.s32.totalorder %v1334_v50, 0  ;;  %v1329_v60 = vunpack.c.l.b16 %v1281_v41  ;;  %vm4344_vm14 = vcmp.ne.s32.totalorder %v1332_v53, 0 }
 0x1f8   : > { %vm4319_vm8 = vmand %vm4900_vm11, %vm1222_vm12  ;;  %v4354_v37 = vadd.f32 %v4204_v25, %v3487_v2  ;;  %vm4360_vm12 = vcmp.ne.s32.totalorder %v1333_v56, 0  ;;  %vm1129_vm11 = vcmp.gt.bf16.partialorder %v1097_v35, 0  ;;  %v4376_v41 = vadd.f32 %v4220_v63, %v3491_v4  ;;  %v1098_v63 = vld [vmem:[%s3284_s30 + $0xc8] sm:$0xff] }
 0x1f9   : > { %vm1223_vm9 = vmpackc.low %vm1182_vm6, %vm1181_vm7  ;;  %vm4348_vm7 = vcmp.ne.s32.totalorder %v1336_v16, 0  ;;  %vm1394_vm6 = vcmp.ne.s32.totalorder %v1330_v5, 0  ;;  %v2344_v36 = vpack.c.bf16 %v4330_v20, %v4315_v8  ;;  %v4381_v50 = vadd.f32 %v1068_v7, %v3487_v2  ;;  %v1102_v25 = vld [vmem:[%s3284_s30 + $0xe8] sm:$0xff] }
 0x1fa   : > { %vm4334_vm3 = vmand %vm4903_vm5, %vm1223_vm9  ;;  %vm4370_vm9 = vcmp.ne.s32.totalorder %v1335_v59, 0  ;;  %v4920_v53 = vpack.c.bf16 %v3958_v6, %v3966_v13  ;;  %vm1393_vm5 = vcmp.ne.s32.totalorder %v1329_v60, 0  ;;  %v4395_v2 = vadd.f32 %v4218_v46, %v3489_v3 }
 0x1fb   : > { %vm1224_vm13 = vmpackc.low %vm1184_vm10, %vm1183_vm0  ;;  %vm4364_vm0 = vcmp.ne.s32.totalorder %v1331_v42, 0  ;;  %v1287_v6 = vsel %vm4334_vm3, 65537, %v2955_v0  ;;  %v2392_v13 = vpack.c.bf16 %v4381_v50, %v4354_v37  ;;  %v4409_v7 = vadd.f32 %v4258_v27, %v3489_v3  ;;  %v1099_v3 = vld [vmem:[%s3284_s30 + $0xd0] sm:$0xff] }
 0x1fc   : > { %vm4356_vm2 = vmand %vm1128_vm4, %vm1224_vm13  ;;  %vm1186_vm13 = vcmp.gt.f32.partialorder %v4274_v28, 0.0  ;;  %v4413_v46 = vadd.f32 %v4260_v45, %v3491_v4  ;;  %v1286_v16 = vsel %vm4319_vm8, 65537, %v2955_v0  ;;  %v4921_v23 = vpack.c.bf16 %v3952_v39, %v3938_v14 }
 0x1fd   : > { %vm2322_vm10 = vmpackc.low %vm4338_vm15, %vm1394_vm6  ;;  %vm1185_vm15 = vcmp.gt.f32.partialorder %v4174_v43, 0.0  ;;  %v1288_v30 = vsel %vm4356_vm2, 65537, %v2955_v0  ;;  %vm1188_vm6 = vcmp.gt.f32.partialorder %v4250_v31, 0.0  ;;  %v1285_v4 = vsel %vm4298_vm1, 65537, %v2955_v0  ;;  %v4627_v31 = vld [vmem:[%s4740_s8] ss:$0 sm:$0xff] }
 0x1fe   : > { %2324 = vmatprep.mubr.msk.bf16.mxu0 %vm2322_vm10, %v4920_v53  ;;  %vm2370_vm4 = vmpackc.low %vm4348_vm7, %vm4344_vm14  ;;  %vm1187_vm7 = vcmp.gt.f32.partialorder %v4236_v21, 0.0  ;;  %vm1130_vm2 = vcmp.gt.bf16.partialorder %v1098_v63, 0  ;;  %v2341_v14 = vpack.c.bf16 %v4409_v7, %v4395_v2  ;;  %v2389_v39 = vpack.c.bf16 %v4413_v46, %v4376_v41 }
 0x1ff   : > { %2372 = vmatprep.mubr.msk.bf16.mxu1 %vm2370_vm4, %v2371_v55  ;;  %vm2325_vm14 = vmpackc.low %vm4360_vm12, %vm1393_vm5  ;;  %v4922_v55 = vpack.c.bf16 %v3955_v47, %v3934_v54  ;;  %vm1189_vm1 = vcmp.gt.f32.partialorder %v4253_v26, 0.0  ;;  %v1100_v54 = vld [vmem:[%s3284_s30 + $0xd8] sm:$0xff]  ;;  %v1342_v47 = vunpack.c.h.b16 %v1287_v6  ;;  %v1340_v45 = vunpack.c.h.b16 %v1286_v16 }
 0x200   : > { %2327 = vmatmul.mubr.msk.bf16.gmra.mrb[48].mxu0 %vm2325_vm14, %v4921_v23  ;;  %vm2373_vm3 = vmpackc.low %vm4370_vm9, %vm4364_vm0  ;;  %vm1190_vm0 = vcmp.gt.f32.partialorder %v4277_v32, 0.0  ;;  %vm1131_vm9 = vcmp.gt.bf16.partialorder %v1099_v3, 0  ;;  %v1344_v19 = vunpack.c.h.b16 %v1288_v30  ;;  %vm1191_vm5 = vcmp.gt.f32.partialorder %v4256_v11, 0.0 }
 0x201   : > { %2375 = vmatmul.mubr.msk.bf16.gmra.mrb[48].mxu1 %vm2373_vm3, %v4922_v55  ;;  %vm1225_vm8 = vmpackc.low %vm1186_vm13, %vm1185_vm15  ;;  %v1338_v5 = vunpack.c.h.b16 %v1285_v4  ;;  %v1341_v56 = vunpack.c.l.b16 %v1287_v6  ;;  %vm1132_vm13 = vcmp.gt.bf16.partialorder %v1100_v54, 0  ;;  %v1339_v42 = vunpack.c.l.b16 %v1286_v16 }
 0x202   : > { %vm4446_vm12 = vmand %vm1129_vm11, %vm1225_vm8  ;;  %vm1192_vm11 = vcmp.gt.f32.partialorder %v4280_v15, 0.0  ;;  %v1343_v59 = vunpack.c.l.b16 %v1288_v30  ;;  %vm1406_vm3 = vcmp.ne.s32.totalorder %v1342_v47, 0  ;;  %v1337_v38 = vunpack.c.l.b16 %v1285_v4 }
 0x203   : > { %vm1226_vm10 = vmpackc.low %vm1188_vm6, %vm1187_vm7  ;;  %vm4463_vm6 = vcmp.ne.s32.totalorder %v1340_v45, 0  ;;  %vm4467_vm8 = vcmp.ne.s32.totalorder %v1344_v19, 0  ;;  %v1289_v53 = vsel %vm4446_vm12, 65537, %v2955_v0  ;;  %v4941_v63 = vpack.c.bf16 %v4099_v34, %v4096_v22  ;;  %v1104_v22 = vld [vmem:[%s3284_s30 + $0xf8] sm:$0xff]  ;;  %s2864_s30 = sshll.u32 %s2956_s14, 4  ;;  %s2865_s30 = int_to_ptr.vmem [resolvable:$false] %s2864_s30 }
 0x204   : > { %vm4453_vm4 = vmand %vm1130_vm2, %vm1226_vm10  ;;  %v4942_v61 = vpack.c.bf16 %v4102_v52, %v4083_v33  ;;  %v1346_v34 = vunpack.c.h.b16 %v1289_v53  ;;  %v1345_v6 = vunpack.c.l.b16 %v1289_v53  ;;  %s2866_s20 = scalar_lea.vmem %s2865_s30, 4096  ;;  %p2867_p8 = scmp.lt.s32.totalorder %s4685_s16, %s2865_s30 }
 0x205   : > { %vm1227_vm15 = vmpackc.low %vm1190_vm0, %vm1189_vm1  ;;  %vm1402_vm1 = vcmp.ne.s32.totalorder %v1338_v5, 0  ;;  %vm4475_vm0 = vcmp.ne.s32.totalorder %v1341_v56, 0  ;;  %v1290_v10 = vsel %vm4453_vm4, 65537, %v2955_v0  ;;  %p2868_p1 = scmp.lt.s32.totalorder %s2866_s20, %s2860_s13 }
 0x206   : > { %vm4459_vm14 = vmand %vm1131_vm9, %vm1227_vm15  ;;  %vm4480_vm9 = vcmp.ne.s32.totalorder %v1339_v42, 0  ;;  %vm1401_vm15 = vcmp.ne.s32.totalorder %v1337_v38, 0  ;;  %v1348_v16 = vunpack.c.h.b16 %v1290_v10  ;;  %v1347_v3 = vunpack.c.l.b16 %v1290_v10 }
 0x207   : > { %vm1228_vm7 = vmpackc.low %vm1192_vm11, %vm1191_vm5  ;;  %vm4484_vm5 = vcmp.ne.s32.totalorder %v1343_v59, 0  ;;  %v1291_v49 = vsel %vm4459_vm14, 65537, %v2955_v0  ;;  %vm1195_vm14 = vcmp.gt.f32.partialorder %v4354_v37, 0.0  ;;  %p2869_p2 = por %p2868_p1, %p2867_p8 }
 0x208   : > { %vm4471_vm2 = vmand %vm1132_vm13, %vm1228_vm7  ;;  %vm1193_vm13 = vcmp.gt.f32.partialorder %v4315_v8, 0.0  ;;  %v1349_v52 = vunpack.c.l.b16 %v1291_v49 }
 0x209   : > { %vm2328_vm10 = vmpackc.low %vm1406_vm3, %vm1402_vm1  ;;  %vm1194_vm3 = vcmp.gt.f32.partialorder %v4395_v2, 0.0  ;;  %vm1197_vm1 = vcmp.gt.f32.partialorder %v4330_v20, 0.0  ;;  %p2870_p5 = pnand %p2869_p2, %p2863_p10 }
 0x20a   : > { %2330 = vmatprep.mubr.msk.bf16.mxu0 %vm2328_vm10, %v2329_v48  ;;  %vm2376_vm11 = vmpackc.low %vm4467_vm8, %vm4463_vm6  ;;  %vm1133_vm6 = vcmp.gt.bf16.partialorder %v1101_v18, 0  ;;  %v1292_v48 = vsel %vm4471_vm2, 65537, %v2955_v0  ;;  %vm1196_vm8 = vcmp.gt.f32.partialorder %v4376_v41, 0.0  ;;  %vm1134_vm2 = vcmp.gt.bf16.partialorder %v1102_v25, 0 }
 0x20b   : > { %2378 = vmatprep.mubr.msk.bf16.mxu1 %vm2376_vm11, %v2377_v57  ;;  %vm2331_vm7 = vmpackc.low %vm4475_vm0, %vm1401_vm15  ;;  %vm1198_vm10 = vcmp.gt.f32.partialorder %v4409_v7, 0.0  ;;  %v1350_v57 = vunpack.c.h.b16 %v1291_v49  ;;  %v1352_v33 = vunpack.c.h.b16 %v1292_v48  ;;  %vm1199_vm15 = vcmp.gt.f32.partialorder %v4381_v50, 0.0 }
 0x20c   : > { %2333 = vmatmul.mubr.msk.bf16.gmra.mrb[52].mxu0 %vm2331_vm7, %v4941_v63  ;;  %vm2379_vm12 = vmpackc.low %vm4484_vm5, %vm4480_vm9  ;;  %vm1135_vm5 = vcmp.gt.bf16.partialorder %v1103_v17, 0  ;;  %vm1136_vm7 = vcmp.gt.bf16.partialorder %v1104_v22, 0  ;;  %v1351_v4 = vunpack.c.l.b16 %v1292_v48 }
 0x20d   : > { %2381 = vmatmul.mubr.msk.bf16.gmra.mrb[52].mxu1 %vm2379_vm12, %v4942_v61  ;;  %vm1229_vm4 = vmpackc.low %vm1194_vm3, %vm1193_vm13  ;;  %vm1200_vm13 = vcmp.gt.f32.partialorder %v4413_v46, 0.0  ;;  %vm4543_vm12 = vcmp.ne.s32.totalorder %v1346_v34, 0 }
 0x20e   : > { %vm1261_vm0 = vmand %vm1133_vm6, %vm1229_vm4 }
 0x20f   : > { %vm1230_vm9 = vmpackc.low %vm1196_vm8, %vm1195_vm14  ;;  %v1293_v30 = vsel %vm1261_vm0, 65537, %v2955_v0  ;;  %vm4547_vm14 = vcmp.ne.s32.totalorder %v1350_v57, 0  ;;  %vm4551_vm8 = vcmp.ne.s32.totalorder %v1345_v6, 0  ;;  %v2700_v57 = vld [vmem:[%s3265_s28 + $0x10] sm:$0xff] }
 0x210   : > { %vm1262_vm11 = vmand %vm1134_vm2, %vm1230_vm9  ;;  %vm4556_vm2 = vcmp.ne.s32.totalorder %v1348_v16, 0  ;;  %v1354_v56 = vunpack.c.h.b16 %v1293_v30  ;;  %v1353_v1 = vunpack.c.l.b16 %v1293_v30 }
 0x211   : > { %v1294_v23 = vsel %vm1262_vm11, 65537, %v2955_v0  ;;  %vm1231_vm3 = vmpackc.low %vm1198_vm10, %vm1197_vm1  ;;  %vm4560_vm1 = vcmp.ne.s32.totalorder %v1352_v33, 0  ;;  %vm4565_vm10 = vcmp.ne.s32.totalorder %v1349_v52, 0  ;;  %vm4578_vm11 = vcmp.ne.s32.totalorder %v1351_v4, 0  ;;  %v2701_v33 = vld [vmem:[%s3265_s28 + $0x18] sm:$0xff] }
 0x212   : > { %vm1263_vm6 = vmand %vm1135_vm5, %vm1231_vm3  ;;  %v1356_v58 = vunpack.c.h.b16 %v1294_v23  ;;  %vm4574_vm5 = vcmp.ne.s32.totalorder %v1347_v3, 0  ;;  %v1355_v60 = vunpack.c.l.b16 %v1294_v23 }
 0x213   : > { %v1295_v47 = vsel %vm1263_vm6, 65537, %v2955_v0  ;;  %vm1232_vm4 = vmpackc.low %vm1200_vm13, %vm1199_vm15 }
 0x214   : > { %vm1264_vm0 = vmand %vm1136_vm7, %vm1232_vm4  ;;  %v1358_v42 = vunpack.c.h.b16 %v1295_v47  ;;  %v1357_v59 = vunpack.c.l.b16 %v1295_v47  ;;  %vm1420_vm3 = vcmp.ne.s32.totalorder %v1356_v58, 0 }
 0x215   : > { %v1296_v35 = vsel %vm1264_vm0, 65537, %v2955_v0  ;;  %vm2334_vm9 = vmpackc.low %vm4547_vm14, %vm4543_vm12  ;;  %vm1418_vm12 = vcmp.ne.s32.totalorder %v1354_v56, 0 }
 0x216   : > { %2336 = vmatprep.mubr.msk.bf16.mxu0 %vm2334_vm9, %v2335_v12  ;;  %vm2382_vm15 = vmpackc.low %vm4560_vm1, %vm4556_vm2  ;;  %vm4589_vm7 = vcmp.ne.s32.totalorder %v1358_v42, 0  ;;  %v1360_v24 = vunpack.c.h.b16 %v1296_v35  ;;  %v1359_v18 = vunpack.c.l.b16 %v1296_v35  ;;  %vm1421_vm4 = vcmp.ne.s32.totalorder %v1357_v59, 0  ;;  %v2702_v35 = vld [vmem:[%s3265_s28 + $0x20] sm:$0xff] }
 0x217   : > { %2384 = vmatprep.mubr.msk.bf16.mxu1 %vm2382_vm15, %v2383_v51  ;;  %vm2337_vm13 = vmpackc.low %vm4565_vm10, %vm4551_vm8  ;;  %vm1419_vm2 = vcmp.ne.s32.totalorder %v1355_v60, 0  ;;  %vm1417_vm10 = vcmp.ne.s32.totalorder %v1353_v1, 0  ;;  %v2703_v60 = vld [vmem:[%s3265_s28 + $0x28] sm:$0xff] }
 0x218   : > { %2339 = vmatmul.mubr.msk.bf16.gmra.mrb[56].mxu0 %vm2337_vm13, %v2338_v40  ;;  %vm2385_vm6 = vmpackc.low %vm4578_vm11, %vm4574_vm5  ;;  %vm1424_vm14 = vcmp.ne.s32.totalorder %v1360_v24, 0  ;;  %vm1423_vm1 = vcmp.ne.s32.totalorder %v1359_v18, 0 }
 0x219   : > { %2387 = vmatmul.mubr.msk.bf16.gmra.mrb[56].mxu1 %vm2385_vm6, %v2386_v9  ;;  %vm2340_vm8 = vmpackc.low %vm4589_vm7, %vm1418_vm12 }
 0x21a   : > { %2342 = vmatprep.mubr.msk.bf16.mxu0 %vm2340_vm8, %v2341_v14  ;;  %vm2388_vm0 = vmpackc.low %vm1424_vm14, %vm1420_vm3 }
 0x21b   : > { %2390 = vmatprep.mubr.msk.bf16.mxu1 %vm2388_vm0, %v2389_v39  ;;  %vm2343_vm9 = vmpackc.low %vm1421_vm4, %vm1417_vm10 }
 0x21c   : > { %vm2391_vm5 = vmpackc.low %vm1423_vm1, %vm1419_vm2 }
 0x220   : > { %2345 = vmatmul.mubr.msk.bf16.gmra.mrb[60].mxu0 %vm2343_vm9, %v2344_v36  ;;  %v2698_v36 = vld [vmem:[%s3265_s28] sm:$0xff] }
 0x221   : > { %2393 = vmatmul.mubr.msk.bf16.gmra.mrb[60].mxu1 %vm2391_vm5, %v2392_v13  ;;  %v2699_v13 = vld [vmem:[%s3265_s28 + $0x8] sm:$0xff] }
 0x2a3   : > { %v2420_v43 = vpop.f32.mrb[32].mxu0 }
 0x2a4   : > { %v2421_v26 = vpop.f32.mrb[33].mxu0 }
 0x2a5   : > { %v2484_v21 = vpop.f32.mrb[32].mxu1  ;;  %v2422_v11 = vadd.f32 %v2421_v26, %v2420_v43  ;;  %v2423_v32 = vpop.f32.mrb[34].mxu0 }
 0x2a6   : > { %v2485_v28 = vpop.f32.mrb[33].mxu1  ;;  %v2424_v9 = vpop.f32.mrb[35].mxu0 }
 0x2a7   : > { %v2486_v15 = vadd.f32 %v2485_v28, %v2484_v21  ;;  %v2487_v40 = vpop.f32.mrb[34].mxu1  ;;  %v1819_v12 = vadd.f32 %v2422_v11, %v4627_v31  ;;  %v2425_v51 = vadd.f32 %v2424_v9, %v2423_v32 }
 0x2a8   : > { %v2488_v8 = vpop.f32.mrb[35].mxu1 }
 0x2a9   : > { %v2489_v20 = vadd.f32 %v2488_v8, %v2487_v40  ;;  %v1916_v37 = vadd.f32 %v2486_v15, %v1819_v12  ;;  %v1822_v41 = vadd.f32 %v2425_v51, %v4627_v31 }
 0x2ab   : > { %v1978_v50 = vadd.f32 %v2698_v36, %v1916_v37  ;;  %v1919_v2 = vadd.f32 %v2489_v20, %v1822_v41  ;;  %v2704_v20 = vld [vmem:[%s3265_s28 + $0x30] sm:$0xff]  ;;  %v2705_v36 = vld [vmem:[%s3265_s28 + $0x38] sm:$0xff] }
 0x2ad   : > { %1994 = vst [vmem:[%s4634_s24] sm:$0xff] %v1978_v50  ;;  %v1979_v7 = vadd.f32 %v2699_v13, %v1919_v2 }
 0x2af   : > { %v2426_v46 = vpop.f32.mrb[36].mxu0  ;;  %1995 = vst [vmem:[%s4634_s24 + $0x8] sm:$0xff] %v1979_v7 }
 0x2b0   : > { %v2490_v14 = vpop.f32.mrb[36].mxu1  ;;  %v2427_v39 = vpop.f32.mrb[37].mxu0 }
 0x2b1   : > { %v2428_v44 = vadd.f32 %v2427_v39, %v2426_v46  ;;  %v2491_v62 = vpop.f32.mrb[37].mxu1  ;;  %v2429_v25 = vpop.f32.mrb[38].mxu0 }
 0x2b2   : > { %v2492_v53 = vadd.f32 %v2491_v62, %v2490_v14  ;;  %v2493_v49 = vpop.f32.mrb[38].mxu1  ;;  %v2430_v10 = vpop.f32.mrb[39].mxu0 }
 0x2b3   : > { %v1827_v48 = vadd.f32 %v2428_v44, %v4627_v31  ;;  %v2431_v63 = vadd.f32 %v2430_v10, %v2429_v25  ;;  %v2494_v17 = vpop.f32.mrb[39].mxu1 }
 0x2b4   : > { %v2495_v61 = vadd.f32 %v2494_v17, %v2493_v49 }
 0x2b5   : > { %v1924_v22 = vadd.f32 %v2492_v53, %v1827_v48  ;;  %v1830_v34 = vadd.f32 %v2431_v63, %v4627_v31 }
 0x2b7   : > { %v1980_v6 = vadd.f32 %v2700_v57, %v1924_v22  ;;  %v1927_v16 = vadd.f32 %v2495_v61, %v1830_v34  ;;  %v2706_v61 = vld [vmem:[%s3265_s28 + $0x40] sm:$0xff]  ;;  %v2707_v57 = vld [vmem:[%s3265_s28 + $0x48] sm:$0xff] }
 0x2b9   : > { %1996 = vst [vmem:[%s4634_s24 + $0x10] sm:$0xff] %v1980_v6  ;;  %v1981_v52 = vadd.f32 %v2701_v33, %v1927_v16 }
 0x2bb   : > { %1997 = vst [vmem:[%s4634_s24 + $0x18] sm:$0xff] %v1981_v52  ;;  %v2432_v30 = vpop.f32.mrb[40].mxu0 }
 0x2bc   : > { %v2496_v23 = vpop.f32.mrb[40].mxu1  ;;  %v2433_v3 = vpop.f32.mrb[41].mxu0 }
 0x2bd   : > { %v2434_v4 = vadd.f32 %v2433_v3, %v2432_v30  ;;  %v2497_v55 = vpop.f32.mrb[41].mxu1  ;;  %v2435_v27 = vpop.f32.mrb[42].mxu0 }
 0x2be   : > { %v2498_v54 = vadd.f32 %v2497_v55, %v2496_v23  ;;  %v2499_v47 = vpop.f32.mrb[42].mxu1  ;;  %v2436_v45 = vpop.f32.mrb[43].mxu0 }
 0x2bf   : > { %v1835_v19 = vadd.f32 %v2434_v4, %v4627_v31  ;;  %v2437_v58 = vadd.f32 %v2436_v45, %v2435_v27  ;;  %v2500_v5 = vpop.f32.mrb[43].mxu1 }
 0x2c0   : > { %v2501_v56 = vadd.f32 %v2500_v5, %v2499_v47 }
 0x2c1   : > { %v1932_v42 = vadd.f32 %v2498_v54, %v1835_v19  ;;  %v1838_v59 = vadd.f32 %v2437_v58, %v4627_v31 }
 0x2c3   : > { %v1982_v38 = vadd.f32 %v2702_v35, %v1932_v42  ;;  %v1935_v29 = vadd.f32 %v2501_v56, %v1838_v59  ;;  %v2708_v56 = vld [vmem:[%s3265_s28 + $0x50] sm:$0xff]  ;;  %v2709_v35 = vld [vmem:[%s3265_s28 + $0x58] sm:$0xff] }
 0x2c5   : > { %1998 = vst [vmem:[%s4634_s24 + $0x20] sm:$0xff] %v1982_v38  ;;  %v1983_v0 = vadd.f32 %v2703_v60, %v1935_v29 }
 0x2c7   : > { %1999 = vst [vmem:[%s4634_s24 + $0x28] sm:$0xff] %v1983_v0  ;;  %v2438_v24 = vpop.f32.mrb[44].mxu0 }
 0x2c8   : > { %v2502_v1 = vpop.f32.mrb[44].mxu1  ;;  %v2439_v18 = vpop.f32.mrb[45].mxu0 }
 0x2c9   : > { %v2440_v43 = vadd.f32 %v2439_v18, %v2438_v24  ;;  %v2503_v21 = vpop.f32.mrb[45].mxu1  ;;  %v2441_v26 = vpop.f32.mrb[46].mxu0 }
 0x2ca   : > { %v2504_v11 = vadd.f32 %v2503_v21, %v2502_v1  ;;  %v2505_v28 = vpop.f32.mrb[46].mxu1  ;;  %v2442_v32 = vpop.f32.mrb[47].mxu0 }
 0x2cb   : > { %v1843_v15 = vadd.f32 %v2440_v43, %v4627_v31  ;;  %v2443_v40 = vadd.f32 %v2442_v32, %v2441_v26  ;;  %v2506_v9 = vpop.f32.mrb[47].mxu1 }
 0x2cc   : > { %v2507_v12 = vadd.f32 %v2506_v9, %v2505_v28 }
 0x2cd   : > { %v1940_v51 = vadd.f32 %v2504_v11, %v1843_v15  ;;  %v1846_v8 = vadd.f32 %v2443_v40, %v4627_v31 }
 0x2cf   : > { %v1984_v37 = vadd.f32 %v2704_v20, %v1940_v51  ;;  %v1943_v41 = vadd.f32 %v2507_v12, %v1846_v8  ;;  %v2710_v12 = vld [vmem:[%s3265_s28 + $0x60] sm:$0xff] }
 0x2d1   : > { %2000 = vst [vmem:[%s4634_s24 + $0x30] sm:$0xff] %v1984_v37  ;;  %v1985_v50 = vadd.f32 %v2705_v36, %v1943_v41  ;;  %v2711_v36 = vld [vmem:[%s3265_s28 + $0x68] sm:$0xff] }
 0x2d3   : > { %2001 = vst [vmem:[%s4634_s24 + $0x38] sm:$0xff] %v1985_v50  ;;  %v2444_v2 = vpop.f32.mrb[48].mxu0 }
 0x2d4   : > { %v2508_v13 = vpop.f32.mrb[48].mxu1  ;;  %v2445_v7 = vpop.f32.mrb[49].mxu0 }
 0x2d5   : > { %v2446_v46 = vadd.f32 %v2445_v7, %v2444_v2  ;;  %v2509_v14 = vpop.f32.mrb[49].mxu1  ;;  %v2447_v39 = vpop.f32.mrb[50].mxu0 }
 0x2d6   : > { %v2510_v44 = vadd.f32 %v2509_v14, %v2508_v13  ;;  %v2511_v62 = vpop.f32.mrb[50].mxu1  ;;  %v2448_v25 = vpop.f32.mrb[51].mxu0 }
 0x2d7   : > { %v1851_v53 = vadd.f32 %v2446_v46, %v4627_v31  ;;  %v2449_v49 = vadd.f32 %v2448_v25, %v2447_v39  ;;  %v2512_v10 = vpop.f32.mrb[51].mxu1 }
 0x2d8   : > { %v2513_v48 = vadd.f32 %v2512_v10, %v2511_v62 }
 0x2d9   : > { %v1948_v63 = vadd.f32 %v2510_v44, %v1851_v53  ;;  %v1854_v17 = vadd.f32 %v2449_v49, %v4627_v31 }
 0x2db   : > { %v1986_v22 = vadd.f32 %v2706_v61, %v1948_v63  ;;  %v1951_v34 = vadd.f32 %v2513_v48, %v1854_v17  ;;  %v2712_v48 = vld [vmem:[%s3265_s28 + $0x70] sm:$0xff]  ;;  %v2713_v61 = vld [vmem:[%s3265_s28 + $0x78] sm:$0xff] }
 0x2dd   : > { %2002 = vst [vmem:[%s4634_s24 + $0x40] sm:$0xff] %v1986_v22  ;;  %v1987_v6 = vadd.f32 %v2707_v57, %v1951_v34 }
 0x2df   : > { %2003 = vst [vmem:[%s4634_s24 + $0x48] sm:$0xff] %v1987_v6  ;;  %v2450_v16 = vpop.f32.mrb[52].mxu0 }
 0x2e0   : > { %v2514_v33 = vpop.f32.mrb[52].mxu1  ;;  %v2451_v52 = vpop.f32.mrb[53].mxu0 }
 0x2e1   : > { %v2452_v30 = vadd.f32 %v2451_v52, %v2450_v16  ;;  %v2515_v23 = vpop.f32.mrb[53].mxu1  ;;  %v2453_v3 = vpop.f32.mrb[54].mxu0 }
 0x2e2   : > { %v2516_v4 = vadd.f32 %v2515_v23, %v2514_v33  ;;  %v2517_v55 = vpop.f32.mrb[54].mxu1  ;;  %v2454_v27 = vpop.f32.mrb[55].mxu0 }
 0x2e3   : > { %v1859_v54 = vadd.f32 %v2452_v30, %v4627_v31  ;;  %v2455_v47 = vadd.f32 %v2454_v27, %v2453_v3  ;;  %v2518_v45 = vpop.f32.mrb[55].mxu1 }
 0x2e4   : > { %v2519_v19 = vadd.f32 %v2518_v45, %v2517_v55 }
 0x2e5   : > { %v1956_v58 = vadd.f32 %v2516_v4, %v1859_v54  ;;  %v1862_v5 = vadd.f32 %v2455_v47, %v4627_v31 }
 0x2e7   : > { %v1988_v42 = vadd.f32 %v2708_v56, %v1956_v58  ;;  %v1959_v59 = vadd.f32 %v2519_v19, %v1862_v5 }
 0x2e9   : > { %2004 = vst [vmem:[%s4634_s24 + $0x50] sm:$0xff] %v1988_v42  ;;  %v1989_v38 = vadd.f32 %v2709_v35, %v1959_v59 }
 0x2eb   : > { %2005 = vst [vmem:[%s4634_s24 + $0x58] sm:$0xff] %v1989_v38  ;;  %v2456_v29 = vpop.f32.mrb[56].mxu0 }
 0x2ec   : > { %v2520_v60 = vpop.f32.mrb[56].mxu1  ;;  %v2457_v0 = vpop.f32.mrb[57].mxu0 }
 0x2ed   : > { %v2458_v24 = vadd.f32 %v2457_v0, %v2456_v29  ;;  %v2521_v1 = vpop.f32.mrb[57].mxu1  ;;  %v2459_v18 = vpop.f32.mrb[58].mxu0 }
 0x2ee   : > { %v2522_v43 = vadd.f32 %v2521_v1, %v2520_v60  ;;  %v2523_v21 = vpop.f32.mrb[58].mxu1  ;;  %v2460_v26 = vpop.f32.mrb[59].mxu0 }
 0x2ef   : > { %v1867_v11 = vadd.f32 %v2458_v24, %v4627_v31  ;;  %v2461_v28 = vadd.f32 %v2460_v26, %v2459_v18  ;;  %v2524_v32 = vpop.f32.mrb[59].mxu1 }
 0x2f0   : > { %v2525_v15 = vadd.f32 %v2524_v32, %v2523_v21 }
 0x2f1   : > { %v1964_v40 = vadd.f32 %v2522_v43, %v1867_v11  ;;  %v1870_v9 = vadd.f32 %v2461_v28, %v4627_v31 }
 0x2f3   : > { %v1990_v51 = vadd.f32 %v2710_v12, %v1964_v40  ;;  %v1967_v8 = vadd.f32 %v2525_v15, %v1870_v9  ;;  %v2462_v20 = vpop.f32.mrb[60].mxu0 }
 0x2f4   : > { %v2526_v37 = vpop.f32.mrb[60].mxu1  ;;  %v2463_v41 = vpop.f32.mrb[61].mxu0 }
 0x2f5   : > { %2006 = vst [vmem:[%s4634_s24 + $0x60] sm:$0xff] %v1990_v51  ;;  %v1991_v50 = vadd.f32 %v2711_v36, %v1967_v8  ;;  %v2464_v2 = vadd.f32 %v2463_v41, %v2462_v20  ;;  %v2527_v13 = vpop.f32.mrb[61].mxu1  ;;  %v2465_v7 = vpop.f32.mrb[62].mxu0 }
 0x2f6   : > { %v2528_v46 = vadd.f32 %v2527_v13, %v2526_v37  ;;  %v2529_v14 = vpop.f32.mrb[62].mxu1  ;;  %v2466_v39 = vpop.f32.mrb[63].mxu0 }
 0x2f7   : > { %2007 = vst [vmem:[%s4634_s24 + $0x68] sm:$0xff] %v1991_v50  ;;  %v1875_v44 = vadd.f32 %v2464_v2, %v4627_v31  ;;  %v2467_v62 = vadd.f32 %v2466_v39, %v2465_v7  ;;  %v2530_v25 = vpop.f32.mrb[63].mxu1 }
 0x2f8   : > { %v2531_v53 = vadd.f32 %v2530_v25, %v2529_v14 }
 0x2f9   : > { %v1972_v49 = vadd.f32 %v2528_v46, %v1875_v44  ;;  %v1878_v10 = vadd.f32 %v2467_v62, %v4627_v31 }
 0x2fb   : > { %v1992_v63 = vadd.f32 %v2712_v48, %v1972_v49  ;;  %v1975_v17 = vadd.f32 %v2531_v53, %v1878_v10 }
 0x2fd   : > { %2008 = vst [vmem:[%s4634_s24 + $0x70] sm:$0xff] %v1992_v63  ;;  %v1993_v22 = vadd.f32 %v2713_v61, %v1975_v17 }
 0x2ff   : > { %2009 = vst [vmem:[%s4634_s24 + $0x78] sm:$0xff] %v1993_v22 }
 0x300   : > { %2873 = shalt.err (!%p2870_p5)
}
 0x301   : > { %s2874_s28 = scalar_lea.hbm %s4683_s26, 2048  ;;  %s2878_s19 = scalar_lea.hbm %s4961_s0, 4096 }
 0x302   : > { %p2875_p6 = scmp.ne.s32.totalorder %s4683_s26, %s2874_s28  ;;  %p2879_p11 = scmp.lt.u32.totalorder %s4683_s26, %s4961_s0 }
 0x303   : > { %p2880_p13 = scmp.lt.u32.totalorder %s2878_s19, %s2874_s28  ;;  %p2882_p12 = scmp.lt.u32.totalorder %s2874_s28, %s4683_s26 }
 0x304   : > { %p2876_p7 = pnand %p2875_p6, %p4962_p3 }
 0x305   : > { %p2881_p0 = por %p2880_p13, %p2879_p11 }
 0x306   : > { %p2877_p4 = pneg %p2876_p7 }
 0x307   : > { %p2883_p9 = por %p2882_p12, %p2881_p0 }
 0x309   : > { %p2884_p10 = pnand %p2883_p9, %p2877_p4 }
 0x30b   : > { %2887 = shalt.err (!%p2884_p10)
}
 0x30c   : > { %s2957_s25 = smov 128   ;;  %s2958_s15 = smov 8  }
 0x30d   : > { %2546 = dma.vmem_to_hbm [thread:$0]  (%p4962_p3), %s4685_s16, 2048, %s4683_s26, %s2011_s4, %s2957_s25, %s2957_s25, %s2958_s15  }
 0x30e PF: > { %s4963_s24 = sld [smem:[#allocation18_spill]]  ;;  %s4964_s9 = sld [smem:[#allocation21_spill]] }
 0x30f   : > { %p4966_p1 = scmp.ge.s32.totalorder %s2942_s12, 2 }
 0x314   : > { %s2039_s23 = sand.u32 1, %s4963_s24   ;;  %p4965_p8 = scmp.ne.s32.totalorder %s4964_s9, 0 }
 0x315   : > { %s2040_s29 = scalar_lea.sflag [#allocation4], %s2039_s23 }
 0x316   : > { %p2566_p2 = pnand %p4966_p1, %p4965_p8 }
 0x318   : > { %2925 = dma.done.wait (!%p2566_p2), %s2040_s29, 2048  }
 0x319   : > { %2927 = vsyncadd (!%p2566_p2), %s2040_s29, 4294965248  ;;  %s4967_s12 = sld [smem:[#allocation19_spill]]  ;;  %s4968_s13 = sld [smem:[#allocation20_spill]] }
 0x31a   : > { %s4969_s30 = smov %s2934_s10  ;;  %s4970_s10 = smov %s2938_s11 }
 0x31f   : > { %p28_p5 = scmp.ge.s32.totalorder %s4967_s12, 4   ;;  %s4971_s11 = smov %s4968_s13 }
 0x321   :  { %30 = sbr.rel (!%p28_p5) target bundleno = 14 (0xe), region = 135 }
 0x328   :  { %2045 = vsyncpa [#allocation3], 1 }
 0x329   :  { %2047 = vsyncpa [#allocation3 + $0x1], 1 }
 0x32a   :  { %2048 = vsyncpa [#allocation6], 1 }
 0x32b   :  { %2050 = vsyncpa [#allocation6 + $0x1], 1 }
 0x32c   :  { %2051 = vsyncpa [#allocation9], 1 }
 0x32d   :  { %2053 = vsyncpa [#allocation9 + $0x1], 1 }
 0x32e   :  { %2054 = vsyncpa [#allocation4], 1 }
 0x32f   :  { %2056 = vsyncpa [#allocation4 + $0x1], 1 }

</bundles_post_ra>
